<compile_context>
chip_gen: v6e
topology: v6e:2x2x1
jax: 0.10.0
libtpu: 0.0.40
codegen_flags: <defaults>
</compile_context>

<pallas_src>
import numpy as np
import jax
import jax.numpy as jnp
from jax import lax
from jax.experimental import pallas as pl
from jax.experimental.pallas import tpu as pltpu

ITERS = 3
LN_EPS = 1e-5  # nn.LayerNorm default eps

# Slab row/slab indices (shared by pack_params and the kernel).
W_Q, W_K, W_V, W_IR, W_IZ, W_IN, W_HR, W_HZ, W_HN = range(9)
(B_NI_G, B_NI_B, B_NS_G, B_NS_B, B_NPF_G, B_NPF_B,
 B_Q, B_K, B_V, B_IR, B_IZ, B_IN, B_HR, B_HZ, B_HN,
 B_MLP2, B_MLP1) = range(17)


# ----------------------------- kernel helpers ------------------------------

def _ln(x, g, b):
    mu = jnp.mean(x, axis=-1, keepdims=True)
    var = jnp.mean((x - mu) ** 2, axis=-1, keepdims=True)
    return (x - mu) * lax.rsqrt(var + LN_EPS) * g + b


def _mm(a, w):
    # a @ w : bf16 MXU operands, f32 accumulation.
    return jnp.dot(a.astype(jnp.bfloat16), w, preferred_element_type=jnp.float32)


def _mm_t(a, b):
    # a[i,d] . b[j,d] -> [i,j]; contraction on the last dim of both operands,
    # letting Mosaic handle the transposed RHS (no explicit XLU transpose).
    return lax.dot_general(a.astype(jnp.bfloat16), b,
                           dimension_numbers=(((1,), (1,)), ((), ())),
                           preferred_element_type=jnp.float32)


# --------------------------------- kernel ----------------------------------

def slot_attention_kernel(cand_ref, pano_ref, w64_ref, wmlp_ref, bias_ref, out_ref):
    # TODO(synk): slot_dropout / input_dropout are nn.Dropout — identity in
    # eval mode; training-mode RNG dropout is not implemented in the kernel.
    S, F = out_ref.shape
    B = pano_ref.shape[0]
    H = wmlp_ref.shape[0] - F

    # ---- bias / LayerNorm-affine slab: load once, pre-broadcast once.
    bias = bias_ref[...]                                   # [17, max(F,H)] f32

    def row(i, rows, width=F):
        return jnp.broadcast_to(bias[i:i + 1, :width], (rows, width))

    ni_g, ni_b = row(B_NI_G, B), row(B_NI_B, B)
    ns_g, ns_b = row(B_NS_G, S), row(B_NS_B, S)
    npf_g, npf_b = row(B_NPF_G, S), row(B_NPF_B, S)
    bq = row(B_Q, S)                                       # scale pre-folded
    bk, bv = row(B_K, B), row(B_V, B)
    b_ir, b_iz, b_in = row(B_IR, S), row(B_IZ, S), row(B_IN, S)
    b_hr, b_hz, b_hn = row(B_HR, S), row(B_HZ, S), row(B_HN, S)
    b2 = row(B_MLP2, S)
    b1 = row(B_MLP1, S, H)

    # ---- inputs: norm_input + k/v projections (computed once, reused 3x).
    pano = _ln(pano_ref[...].astype(jnp.float32), ni_g, ni_b)     # [B, F]
    k_b = (_mm(pano, w64_ref[W_K]) + bk).astype(jnp.bfloat16)     # [B, F]
    v_b = (_mm(pano, w64_ref[W_V]) + bv).astype(jnp.bfloat16)     # [B, F]

    slots = cand_ref[...].astype(jnp.float32)                     # [S, F]

    for _ in range(ITERS):
        slots_prev = slots

        # q = to_q(norm_slots(slots)); attention scale folded into wq/bq.
        q = _mm(_ln(slots, ns_g, ns_b), w64_ref[W_Q]) + bq        # [S, F]

        # Hidden-path GRU gates depend only on slots_prev: push them to the MXU
        # ahead of the dependent softmax chain so they overlap it.
        ghr = _mm(slots_prev, w64_ref[W_HR]) + b_hr
        ghz = _mm(slots_prev, w64_ref[W_HZ]) + b_hz
        ghn = _mm(slots_prev, w64_ref[W_HN]) + b_hn

        # dots = einsum('id,jd->ij', q, k) * scale ; softmax over j.
        dots = _mm_t(q, k_b)                                      # [S, B]
        dots = dots - jnp.max(dots, axis=1, keepdims=True)
        e = jnp.exp(dots)
        attn = e * pl.reciprocal(jnp.sum(e, axis=1, keepdims=True), approx=False)

        # updates = einsum('jd,ij->id', v, attn) == attn @ v
        updates = _mm(attn, v_b)                                  # [S, F]

        # GRUCell(updates, slots_prev)
        r = jax.nn.sigmoid(_mm(updates, w64_ref[W_IR]) + b_ir + ghr)
        z = jax.nn.sigmoid(_mm(updates, w64_ref[W_IZ]) + b_iz + ghz)
        n = jnp.tanh(_mm(updates, w64_ref[W_IN]) + b_in + r * ghn)
        h = (1.0 - z) * n + z * slots_prev                        # [S, F]

        # gru_updates + mlp(norm_pre_ff(gru_updates))
        hn = _ln(h, npf_g, npf_b)
        w1 = wmlp_ref[pl.ds(0, F), pl.ds(0, H)]                   # [F, H] bf16
        w2 = wmlp_ref[pl.ds(F, H), pl.ds(0, F)]                   # [H, F] bf16
        m = jnp.maximum(_mm(hn, w1) + b1, 0.0)                    # [S, H]
        slots = h + _mm(m, w2) + b2                               # [S, F]

    out_ref[...] = slots.astype(out_ref.dtype)


# ---------------------- one-time parameter packing ---------------------------

def pack_params(params, *, dim):
    """Fuse/scale/cast/pack the 19 weight arrays into 3 slabs.  Done ONCE,
    outside the per-call path (the wrapper does no XLA work on weights)."""
    scale = float(dim) ** (-0.5)
    F = params["wk"].shape[0]
    H = params["w1"].shape[1]
    wide = max(F, H)

    mats = [None] * 9
    mats[W_Q] = params["wq"] * scale          # fold attention scale into q proj
    mats[W_K] = params["wk"]
    mats[W_V] = params["wv"]
    mats[W_IR], mats[W_IZ], mats[W_IN] = (params["w_ih"][c] for c in range(3))
    mats[W_HR], mats[W_HZ], mats[W_HN] = (params["w_hh"][c] for c in range(3))
    w64 = jnp.stack(mats, axis=0).astype(jnp.bfloat16)            # [9, F, F]

    wmlp = jnp.zeros((F + H, wide), jnp.float32)
    wmlp = wmlp.at[:F, :H].set(params["w1"])
    wmlp = wmlp.at[F:, :F].set(params["w2"])
    wmlp = wmlp.astype(jnp.bfloat16)                              # [F+H, wide]

    rows = [None] * 17
    rows[B_NI_G], rows[B_NI_B] = params["ni_g"], params["ni_b"]
    rows[B_NS_G], rows[B_NS_B] = params["ns_g"], params["ns_b"]
    rows[B_NPF_G], rows[B_NPF_B] = params["npf_g"], params["npf_b"]
    rows[B_Q] = params["bq"] * scale
    rows[B_K], rows[B_V] = params["bk"], params["bv"]
    rows[B_IR], rows[B_IZ], rows[B_IN] = (params["b_ih"][c] for c in range(3))
    rows[B_HR], rows[B_HZ], rows[B_HN] = (params["b_hh"][c] for c in range(3))
    rows[B_MLP2] = params["b2"]
    rows[B_MLP1] = params["b1"]
    pad = lambda x: jnp.pad(x, ((0, 0), (0, wide - x.shape[1])))
    bias = jnp.concatenate([pad(r) for r in rows], axis=0).astype(jnp.float32)

    return dict(w64=w64, wmlp=wmlp, bias=bias)                    # [17, wide]


# -------------------------------- wrapper -----------------------------------

def slot_attention(cand_feat, pano_feat, packed):
    """cand_feat [N, S, F], pano_feat [N, B, F]: N instances sharing weights,
    batched under a parallel grid axis (one instance per grid step)."""
    N, S, F = cand_feat.shape
    _, B, _ = pano_feat.shape
    w64, wmlp, bias = packed["w64"], packed["wmlp"], packed["bias"]

    # Per-block VMEM footprint is ~200 KB (weights resident + one instance), so
    # the default scoped-VMEM limit holds on v5e/v6e/v7x; re-budget (and set
    # pltpu.CompilerParams(vmem_limit_bytes=...)) if instances get larger or
    # several instances are packed per block.
    return pl.pallas_call(
        slot_attention_kernel,
        out_shape=jax.ShapeDtypeStruct((N, S, F), cand_feat.dtype),
        grid=(N,),
        in_specs=[
            pl.BlockSpec((None, S, F), lambda n: (n, 0, 0)),   # cand (aliased)
            pl.BlockSpec((None, B, F), lambda n: (n, 0, 0)),   # pano
            pl.BlockSpec(w64.shape, lambda n: (0, 0, 0)),      # weights: DMA'd
            pl.BlockSpec(wmlp.shape, lambda n: (0, 0)),        #  once, stay
            pl.BlockSpec(bias.shape, lambda n: (0, 0)),        #  VMEM-resident
        ],
        out_specs=pl.BlockSpec((None, S, F), lambda n: (n, 0, 0)),
        input_output_aliases={0: 0},   # slots output reuses cand_feat's buffer
        compiler_params=pltpu.CompilerParams(
            dimension_semantics=("parallel",)),                # 2 TCs on v7x
    )(cand_feat, pano_feat, w64, wmlp, bias)


# -------------------------- pure-JAX reference -------------------------------

def slot_attention_ref(cand_feat, pano_feat, p, *, dim):
    scale = float(dim) ** (-0.5)
    ln = lambda x, g, b: (x - x.mean(-1, keepdims=True)) / jnp.sqrt(
        x.var(-1, keepdims=True) + LN_EPS) * g + b

    pano = ln(pano_feat, p["ni_g"], p["ni_b"])
    k = pano @ p["wk"] + p["bk"]
    v = pano @ p["wv"] + p["bv"]
    slots = cand_feat
    for _ in range(ITERS):
        slots_prev = slots
        q = ln(slots, p["ns_g"], p["ns_b"]) @ p["wq"] + p["bq"]
        dots = jnp.einsum("id,jd->ij", q, k) * scale
        attn = jax.nn.softmax(dots, axis=1)
        updates = jnp.einsum("jd,ij->id", v, attn)
        gi = [updates @ p["w_ih"][c] + p["b_ih"][c] for c in range(3)]
        gh = [slots_prev @ p["w_hh"][c] + p["b_hh"][c] for c in range(3)]
        r = jax.nn.sigmoid(gi[0] + gh[0])
        z = jax.nn.sigmoid(gi[1] + gh[1])
        n = jnp.tanh(gi[2] + r * gh[2])
        h = (1.0 - z) * n + z * slots_prev
        hn = ln(h, p["npf_g"], p["npf_b"])
        slots = h + jnp.maximum(hn @ p["w1"] + p["b1"], 0.0) @ p["w2"] + p["b2"]
    return slots


# ------------------------------ param init -----------------------------------

def init_params(key, dim, feature_size, hidden_dim_cfg):
    D, F = dim, feature_size
    H = max(dim, hidden_dim_cfg, feature_size)
    ks = jax.random.split(key, 12)

    def lin(k, d_in, d_out):
        kw, kb = jax.random.split(k)
        w = jax.random.normal(kw, (d_in, d_out), jnp.float32) * 0.05  # pre-transposed
        b = jax.random.normal(kb, (1, d_out), jnp.float32) * 0.05
        return w, b

    def lnorm(k, d):
        kg, kb = jax.random.split(k)
        g = 1.0 + 0.05 * jax.random.normal(kg, (1, d), jnp.float32)
        b = 0.05 * jax.random.normal(kb, (1, d), jnp.float32)
        return g, b

    wq, bq = lin(ks[0], D, D)
    wk, bk = lin(ks[1], D, D)
    wv, bv = lin(ks[2], F, F)
    w1, b1 = lin(ks[3], F, H)
    w2, b2 = lin(ks[4], H, F)
    ni_g, ni_b = lnorm(ks[5], F)
    ns_g, ns_b = lnorm(ks[6], F)
    npf_g, npf_b = lnorm(ks[7], F)
    # GRUCell(feature_size, feature_size): r/z/n gates stacked on leading axis,
    # each weight stored pre-transposed as [in, out] = [F, F].
    w_ih = jax.random.normal(ks[8], (3, F, F), jnp.float32) * 0.05
    w_hh = jax.random.normal(ks[9], (3, F, F), jnp.float32) * 0.05
    b_ih = jax.random.normal(ks[10], (3, 1, F), jnp.float32) * 0.05
    b_hh = jax.random.normal(ks[11], (3, 1, F), jnp.float32) * 0.05

    return dict(ni_g=ni_g, ni_b=ni_b, wk=wk, bk=bk, wv=wv, bv=bv, wq=wq, bq=bq,
                ns_g=ns_g, ns_b=ns_b, w_ih=w_ih, w_hh=w_hh, b_ih=b_ih, b_hh=b_hh,
                npf_g=npf_g, npf_b=npf_b, w1=w1, b1=b1, w2=w2, b2=b2)


# --------------------------------- main --------------------------------------

if __name__ == "__main__":
    # Module is only shape-consistent when dim == feature_size.
    DIM = 64           # dim
    FEAT = 64          # feature_size
    HID_CFG = 128      # hidden_dim -> H = max(DIM, HID_CFG, FEAT) = 128
    N_INST = 4         # batched SlotAttention instances (parallel grid axis)
    N_SLOTS = 8        # rows of cand_feat (slots)
    N_PANO = 16        # rows of pano_feat (b)

    key = jax.random.PRNGKey(0)
    k1, k2, k3 = jax.random.split(key, 3)
    cand_feat = jax.random.normal(k1, (N_INST, N_SLOTS, FEAT), jnp.float32)
    pano_feat = jax.random.normal(k2, (N_INST, N_PANO, FEAT), jnp.float32)
    params = init_params(k3, DIM, FEAT, HID_CFG)

    ref = jax.block_until_ready(
        jax.vmap(lambda c, p: slot_attention_ref(c, p, params, dim=DIM))(
            cand_feat, pano_feat))

    packed = pack_params(params, dim=DIM)      # one-time weight fusion/packing
    out = jax.block_until_ready(slot_attention(cand_feat, pano_feat, packed))

    assert out.shape == (N_INST, N_SLOTS, FEAT)
    # Kernel feeds the MXU bf16 operands (f32 accumulation); tolerance reflects
    # bf16 operand rounding across 3 slot-attention iterations.
    assert np.allclose(np.asarray(out), np.asarray(ref), atol=3e-2, rtol=3e-2), (
        "kernel/reference mismatch: max abs diff "
        f"{np.max(np.abs(np.asarray(out) - np.asarray(ref)))}")

    print("KERNEL_OK")
</pallas_src>

<mosaic_0001>
module attributes {stable_mosaic.version = 11 : i64} {
  func.func @slot_attention_kernel(%arg0: i32, %arg1: memref<1x8x64xf32, #tpu.memory_space<vmem>>, %arg2: memref<1x16x64xf32, #tpu.memory_space<vmem>>, %arg3: memref<9x64x64xbf16, #tpu.memory_space<vmem>>, %arg4: memref<192x128xbf16, #tpu.memory_space<vmem>>, %arg5: memref<17x128xf32, #tpu.memory_space<vmem>>, %arg6: memref<1x8x64xf32, #tpu.memory_space<vmem>>) attributes {dimension_semantics = [#tpu.dimension_semantics<parallel>], iteration_bounds = array<i64: 4>, scalar_prefetch = 0 : i64, scratch_operands = 0 : i64, tpu.core_type = #tpu.core_type<tc>, window_params = [{transform_indices = @transform_0, window_bounds = array<i64: 1, 8, 64>}, {transform_indices = @transform_1, window_bounds = array<i64: 1, 16, 64>}, {pipeline_mode = #tpu.pipeline_mode<synchronous>, transform_indices = @transform_2, window_bounds = array<i64: 9, 64, 64>}, {pipeline_mode = #tpu.pipeline_mode<synchronous>, transform_indices = @transform_3, window_bounds = array<i64: 192, 128>}, {pipeline_mode = #tpu.pipeline_mode<synchronous>, transform_indices = @transform_4, window_bounds = array<i64: 17, 128>}, {transform_indices = @transform_5, window_bounds = array<i64: 1, 8, 64>}]} {
    %c0 = arith.constant 0 : index
    %c0_0 = arith.constant 0 : index
    %0 = vector.load %arg5[%c0, %c0_0] : memref<17x128xf32, #tpu.memory_space<vmem>>, vector<17x128xf32>
    %1 = vector.extract_strided_slice %0 {offsets = [0, 0], sizes = [1, 64], strides = [1, 1]} : vector<17x128xf32> to vector<1x64xf32>
    %2 = vector.shape_cast %1 : vector<1x64xf32> to vector<1x64xf32>
    %3 = vector.broadcast %2 : vector<1x64xf32> to vector<16x64xf32>
    %4 = vector.extract_strided_slice %0 {offsets = [1, 0], sizes = [1, 64], strides = [1, 1]} : vector<17x128xf32> to vector<1x64xf32>
    %5 = vector.shape_cast %4 : vector<1x64xf32> to vector<1x64xf32>
    %6 = vector.broadcast %5 : vector<1x64xf32> to vector<16x64xf32>
    %7 = vector.extract_strided_slice %0 {offsets = [2, 0], sizes = [1, 64], strides = [1, 1]} : vector<17x128xf32> to vector<1x64xf32>
    %8 = vector.shape_cast %7 : vector<1x64xf32> to vector<1x64xf32>
    %9 = vector.broadcast %8 : vector<1x64xf32> to vector<8x64xf32>
    %10 = vector.extract_strided_slice %0 {offsets = [3, 0], sizes = [1, 64], strides = [1, 1]} : vector<17x128xf32> to vector<1x64xf32>
    %11 = vector.shape_cast %10 : vector<1x64xf32> to vector<1x64xf32>
    %12 = vector.broadcast %11 : vector<1x64xf32> to vector<8x64xf32>
    %13 = vector.extract_strided_slice %0 {offsets = [4, 0], sizes = [1, 64], strides = [1, 1]} : vector<17x128xf32> to vector<1x64xf32>
    %14 = vector.shape_cast %13 : vector<1x64xf32> to vector<1x64xf32>
    %15 = vector.broadcast %14 : vector<1x64xf32> to vector<8x64xf32>
    %16 = vector.extract_strided_slice %0 {offsets = [5, 0], sizes = [1, 64], strides = [1, 1]} : vector<17x128xf32> to vector<1x64xf32>
    %17 = vector.shape_cast %16 : vector<1x64xf32> to vector<1x64xf32>
    %18 = vector.broadcast %17 : vector<1x64xf32> to vector<8x64xf32>
    %19 = vector.extract_strided_slice %0 {offsets = [6, 0], sizes = [1, 64], strides = [1, 1]} : vector<17x128xf32> to vector<1x64xf32>
    %20 = vector.shape_cast %19 : vector<1x64xf32> to vector<1x64xf32>
    %21 = vector.broadcast %20 : vector<1x64xf32> to vector<8x64xf32>
    %22 = vector.extract_strided_slice %0 {offsets = [7, 0], sizes = [1, 64], strides = [1, 1]} : vector<17x128xf32> to vector<1x64xf32>
    %23 = vector.shape_cast %22 : vector<1x64xf32> to vector<1x64xf32>
    %24 = vector.broadcast %23 : vector<1x64xf32> to vector<16x64xf32>
    %25 = vector.extract_strided_slice %0 {offsets = [8, 0], sizes = [1, 64], strides = [1, 1]} : vector<17x128xf32> to vector<1x64xf32>
    %26 = vector.shape_cast %25 : vector<1x64xf32> to vector<1x64xf32>
    %27 = vector.broadcast %26 : vector<1x64xf32> to vector<16x64xf32>
    %28 = vector.extract_strided_slice %0 {offsets = [9, 0], sizes = [1, 64], strides = [1, 1]} : vector<17x128xf32> to vector<1x64xf32>
    %29 = vector.shape_cast %28 : vector<1x64xf32> to vector<1x64xf32>
    %30 = vector.broadcast %29 : vector<1x64xf32> to vector<8x64xf32>
    %31 = vector.extract_strided_slice %0 {offsets = [10, 0], sizes = [1, 64], strides = [1, 1]} : vector<17x128xf32> to vector<1x64xf32>
    %32 = vector.shape_cast %31 : vector<1x64xf32> to vector<1x64xf32>
    %33 = vector.broadcast %32 : vector<1x64xf32> to vector<8x64xf32>
    %34 = vector.extract_strided_slice %0 {offsets = [11, 0], sizes = [1, 64], strides = [1, 1]} : vector<17x128xf32> to vector<1x64xf32>
    %35 = vector.shape_cast %34 : vector<1x64xf32> to vector<1x64xf32>
    %36 = vector.broadcast %35 : vector<1x64xf32> to vector<8x64xf32>
    %37 = vector.extract_strided_slice %0 {offsets = [12, 0], sizes = [1, 64], strides = [1, 1]} : vector<17x128xf32> to vector<1x64xf32>
    %38 = vector.shape_cast %37 : vector<1x64xf32> to vector<1x64xf32>
    %39 = vector.broadcast %38 : vector<1x64xf32> to vector<8x64xf32>
    %40 = vector.extract_strided_slice %0 {offsets = [13, 0], sizes = [1, 64], strides = [1, 1]} : vector<17x128xf32> to vector<1x64xf32>
    %41 = vector.shape_cast %40 : vector<1x64xf32> to vector<1x64xf32>
    %42 = vector.broadcast %41 : vector<1x64xf32> to vector<8x64xf32>
    %43 = vector.extract_strided_slice %0 {offsets = [14, 0], sizes = [1, 64], strides = [1, 1]} : vector<17x128xf32> to vector<1x64xf32>
    %44 = vector.shape_cast %43 : vector<1x64xf32> to vector<1x64xf32>
    %45 = vector.broadcast %44 : vector<1x64xf32> to vector<8x64xf32>
    %46 = vector.extract_strided_slice %0 {offsets = [15, 0], sizes = [1, 64], strides = [1, 1]} : vector<17x128xf32> to vector<1x64xf32>
    %47 = vector.shape_cast %46 : vector<1x64xf32> to vector<1x64xf32>
    %48 = vector.broadcast %47 : vector<1x64xf32> to vector<8x64xf32>
    %49 = vector.extract_strided_slice %0 {offsets = [16, 0], sizes = [1, 128], strides = [1, 1]} : vector<17x128xf32> to vector<1x128xf32>
    %50 = vector.shape_cast %49 : vector<1x128xf32> to vector<1x128xf32>
    %51 = vector.broadcast %50 : vector<1x128xf32> to vector<8x128xf32>
    %c0_1 = arith.constant 0 : index
    %c0_2 = arith.constant 0 : index
    %c0_3 = arith.constant 0 : index
    %52 = vector.load %arg2[%c0_1, %c0_2, %c0_3] : memref<1x16x64xf32, #tpu.memory_space<vmem>>, vector<1x16x64xf32>
    %53 = vector.shape_cast %52 : vector<1x16x64xf32> to vector<16x64xf32>
    %cst = arith.constant dense<0.000000e+00> : vector<16xf32>
    %54 = vector.multi_reduction <add>, %53, %cst [1] : vector<16x64xf32> to vector<16xf32>
    %55 = vector.shape_cast %54 : vector<16xf32> to vector<16x1xf32>
    %cst_4 = arith.constant 6.400000e+01 : f32
    %56 = vector.broadcast %cst_4 : f32 to vector<16x1xf32>
    %57 = arith.divf %55, %56 : vector<16x1xf32>
    %58 = vector.broadcast %57 : vector<16x1xf32> to vector<16x64xf32>
    %59 = arith.subf %53, %58 : vector<16x64xf32>
    %60 = arith.mulf %59, %59 : vector<16x64xf32>
    %cst_5 = arith.constant dense<0.000000e+00> : vector<16xf32>
    %61 = vector.multi_reduction <add>, %60, %cst_5 [1] : vector<16x64xf32> to vector<16xf32>
    %62 = vector.shape_cast %61 : vector<16xf32> to vector<16x1xf32>
    %cst_6 = arith.constant 6.400000e+01 : f32
    %63 = vector.broadcast %cst_6 : f32 to vector<16x1xf32>
    %64 = arith.divf %62, %63 : vector<16x1xf32>
    %65 = vector.broadcast %57 : vector<16x1xf32> to vector<16x64xf32>
    %66 = arith.subf %53, %65 : vector<16x64xf32>
    %cst_7 = arith.constant 9.99999974E-6 : f32
    %67 = vector.broadcast %cst_7 : f32 to vector<16x1xf32>
    %68 = arith.addf %64, %67 : vector<16x1xf32>
    %69 = math.rsqrt %68 : vector<16x1xf32>
    %70 = vector.broadcast %69 : vector<16x1xf32> to vector<16x64xf32>
    %71 = arith.mulf %66, %70 : vector<16x64xf32>
    %72 = arith.mulf %71, %3 : vector<16x64xf32>
    %73 = arith.addf %72, %6 : vector<16x64xf32>
    %c1 = arith.constant 1 : index
    %c0_8 = arith.constant 0 : index
    %c0_9 = arith.constant 0 : index
    %74 = vector.load %arg3[%c1, %c0_8, %c0_9] : memref<9x64x64xbf16, #tpu.memory_space<vmem>>, vector<1x64x64xbf16>
    %75 = vector.shape_cast %74 : vector<1x64x64xbf16> to vector<64x64xbf16>
    %76 = arith.truncf %73 : vector<16x64xf32> to vector<16x64xbf16>
    %cst_10 = arith.constant dense<0.000000e+00> : vector<16x64xf32>
    %77 = tpu.matmul %76, %75, %cst_10 {dimension_numbers = #tpu.dot_dimension_numbers<[1], [0], [0], [1], [0, 0, 1, 1], [], []>} : vector<16x64xbf16>, vector<64x64xbf16>, vector<16x64xf32> -> vector<16x64xf32>
    %78 = arith.addf %77, %24 : vector<16x64xf32>
    %79 = arith.truncf %78 : vector<16x64xf32> to vector<16x64xbf16>
    %c2 = arith.constant 2 : index
    %c0_11 = arith.constant 0 : index
    %c0_12 = arith.constant 0 : index
    %80 = vector.load %arg3[%c2, %c0_11, %c0_12] : memref<9x64x64xbf16, #tpu.memory_space<vmem>>, vector<1x64x64xbf16>
    %81 = vector.shape_cast %80 : vector<1x64x64xbf16> to vector<64x64xbf16>
    %82 = arith.truncf %73 : vector<16x64xf32> to vector<16x64xbf16>
    %cst_13 = arith.constant dense<0.000000e+00> : vector<16x64xf32>
    %83 = tpu.matmul %82, %81, %cst_13 {dimension_numbers = #tpu.dot_dimension_numbers<[1], [0], [0], [1], [0, 0, 1, 1], [], []>} : vector<16x64xbf16>, vector<64x64xbf16>, vector<16x64xf32> -> vector<16x64xf32>
    %84 = arith.addf %83, %27 : vector<16x64xf32>
    %85 = arith.truncf %84 : vector<16x64xf32> to vector<16x64xbf16>
    %c0_14 = arith.constant 0 : index
    %c0_15 = arith.constant 0 : index
    %c0_16 = arith.constant 0 : index
    %86 = vector.load %arg1[%c0_14, %c0_15, %c0_16] : memref<1x8x64xf32, #tpu.memory_space<vmem>>, vector<1x8x64xf32>
    %87 = vector.shape_cast %86 : vector<1x8x64xf32> to vector<8x64xf32>
    %cst_17 = arith.constant dense<0.000000e+00> : vector<8xf32>
    %88 = vector.multi_reduction <add>, %87, %cst_17 [1] : vector<8x64xf32> to vector<8xf32>
    %89 = vector.shape_cast %88 : vector<8xf32> to vector<8x1xf32>
    %cst_18 = arith.constant 6.400000e+01 : f32
    %90 = vector.broadcast %cst_18 : f32 to vector<8x1xf32>
    %91 = arith.divf %89, %90 : vector<8x1xf32>
    %92 = vector.broadcast %91 : vector<8x1xf32> to vector<8x64xf32>
    %93 = arith.subf %87, %92 : vector<8x64xf32>
    %94 = arith.mulf %93, %93 : vector<8x64xf32>
    %cst_19 = arith.constant dense<0.000000e+00> : vector<8xf32>
    %95 = vector.multi_reduction <add>, %94, %cst_19 [1] : vector<8x64xf32> to vector<8xf32>
    %96 = vector.shape_cast %95 : vector<8xf32> to vector<8x1xf32>
    %cst_20 = arith.constant 6.400000e+01 : f32
    %97 = vector.broadcast %cst_20 : f32 to vector<8x1xf32>
    %98 = arith.divf %96, %97 : vector<8x1xf32>
    %99 = vector.broadcast %91 : vector<8x1xf32> to vector<8x64xf32>
    %100 = arith.subf %87, %99 : vector<8x64xf32>
    %cst_21 = arith.constant 9.99999974E-6 : f32
    %101 = vector.broadcast %cst_21 : f32 to vector<8x1xf32>
    %102 = arith.addf %98, %101 : vector<8x1xf32>
    %103 = math.rsqrt %102 : vector<8x1xf32>
    %104 = vector.broadcast %103 : vector<8x1xf32> to vector<8x64xf32>
    %105 = arith.mulf %100, %104 : vector<8x64xf32>
    %106 = arith.mulf %105, %9 : vector<8x64xf32>
    %107 = arith.addf %106, %12 : vector<8x64xf32>
    %c0_22 = arith.constant 0 : index
    %c0_23 = arith.constant 0 : index
    %c0_24 = arith.constant 0 : index
    %108 = vector.load %arg3[%c0_22, %c0_23, %c0_24] : memref<9x64x64xbf16, #tpu.memory_space<vmem>>, vector<1x64x64xbf16>
    %109 = vector.shape_cast %108 : vector<1x64x64xbf16> to vector<64x64xbf16>
    %110 = arith.truncf %107 : vector<8x64xf32> to vector<8x64xbf16>
    %cst_25 = arith.constant dense<0.000000e+00> : vector<8x64xf32>
    %111 = tpu.matmul %110, %109, %cst_25 {dimension_numbers = #tpu.dot_dimension_numbers<[1], [0], [0], [1], [0, 0, 1, 1], [], []>} : vector<8x64xbf16>, vector<64x64xbf16>, vector<8x64xf32> -> vector<8x64xf32>
    %112 = arith.addf %111, %21 : vector<8x64xf32>
    %c6 = arith.constant 6 : index
    %c0_26 = arith.constant 0 : index
    %c0_27 = arith.constant 0 : index
    %113 = vector.load %arg3[%c6, %c0_26, %c0_27] : memref<9x64x64xbf16, #tpu.memory_space<vmem>>, vector<1x64x64xbf16>
    %114 = vector.shape_cast %113 : vector<1x64x64xbf16> to vector<64x64xbf16>
    %115 = arith.truncf %87 : vector<8x64xf32> to vector<8x64xbf16>
    %cst_28 = arith.constant dense<0.000000e+00> : vector<8x64xf32>
    %116 = tpu.matmul %115, %114, %cst_28 {dimension_numbers = #tpu.dot_dimension_numbers<[1], [0], [0], [1], [0, 0, 1, 1], [], []>} : vector<8x64xbf16>, vector<64x64xbf16>, vector<8x64xf32> -> vector<8x64xf32>
    %117 = arith.addf %116, %39 : vector<8x64xf32>
    %c7 = arith.constant 7 : index
    %c0_29 = arith.constant 0 : index
    %c0_30 = arith.constant 0 : index
    %118 = vector.load %arg3[%c7, %c0_29, %c0_30] : memref<9x64x64xbf16, #tpu.memory_space<vmem>>, vector<1x64x64xbf16>
    %119 = vector.shape_cast %118 : vector<1x64x64xbf16> to vector<64x64xbf16>
    %120 = arith.truncf %87 : vector<8x64xf32> to vector<8x64xbf16>
    %cst_31 = arith.constant dense<0.000000e+00> : vector<8x64xf32>
    %121 = tpu.matmul %120, %119, %cst_31 {dimension_numbers = #tpu.dot_dimension_numbers<[1], [0], [0], [1], [0, 0, 1, 1], [], []>} : vector<8x64xbf16>, vector<64x64xbf16>, vector<8x64xf32> -> vector<8x64xf32>
    %122 = arith.addf %121, %42 : vector<8x64xf32>
    %c8 = arith.constant 8 : index
    %c0_32 = arith.constant 0 : index
    %c0_33 = arith.constant 0 : index
    %123 = vector.load %arg3[%c8, %c0_32, %c0_33] : memref<9x64x64xbf16, #tpu.memory_space<vmem>>, vector<1x64x64xbf16>
    %124 = vector.shape_cast %123 : vector<1x64x64xbf16> to vector<64x64xbf16>
    %125 = arith.truncf %87 : vector<8x64xf32> to vector<8x64xbf16>
    %cst_34 = arith.constant dense<0.000000e+00> : vector<8x64xf32>
    %126 = tpu.matmul %125, %124, %cst_34 {dimension_numbers = #tpu.dot_dimension_numbers<[1], [0], [0], [1], [0, 0, 1, 1], [], []>} : vector<8x64xbf16>, vector<64x64xbf16>, vector<8x64xf32> -> vector<8x64xf32>
    %127 = arith.addf %126, %45 : vector<8x64xf32>
    %128 = arith.truncf %112 : vector<8x64xf32> to vector<8x64xbf16>
    %cst_35 = arith.constant dense<0.000000e+00> : vector<8x16xf32>
    %129 = tpu.matmul %128, %79, %cst_35 {dimension_numbers = #tpu.dot_dimension_numbers<[1], [1], [0], [0], [0, 0, 1, 0], [], []>} : vector<8x64xbf16>, vector<16x64xbf16>, vector<8x16xf32> -> vector<8x16xf32>
    %cst_36 = arith.constant dense<0xFF800000> : vector<8xf32>
    %130 = vector.multi_reduction <maximumf>, %129, %cst_36 [1] : vector<8x16xf32> to vector<8xf32>
    %131 = vector.shape_cast %130 : vector<8xf32> to vector<8x1xf32>
    %132 = vector.broadcast %131 : vector<8x1xf32> to vector<8x16xf32>
    %133 = arith.subf %129, %132 : vector<8x16xf32>
    %134 = math.exp %133 : vector<8x16xf32>
    %cst_37 = arith.constant dense<0.000000e+00> : vector<8xf32>
    %135 = vector.multi_reduction <add>, %134, %cst_37 [1] : vector<8x16xf32> to vector<8xf32>
    %136 = vector.shape_cast %135 : vector<8xf32> to vector<8x1xf32>
    %137 = tpu.reciprocal %136 : vector<8x1xf32> -> vector<8x1xf32>
    %138 = vector.broadcast %137 : vector<8x1xf32> to vector<8x16xf32>
    %139 = arith.mulf %134, %138 : vector<8x16xf32>
    %140 = arith.truncf %139 : vector<8x16xf32> to vector<8x16xbf16>
    %cst_38 = arith.constant dense<0.000000e+00> : vector<8x64xf32>
    %141 = tpu.matmul %140, %85, %cst_38 {dimension_numbers = #tpu.dot_dimension_numbers<[1], [0], [0], [1], [0, 0, 1, 1], [], []>} : vector<8x16xbf16>, vector<16x64xbf16>, vector<8x64xf32> -> vector<8x64xf32>
    %c3 = arith.constant 3 : index
    %c0_39 = arith.constant 0 : index
    %c0_40 = arith.constant 0 : index
    %142 = vector.load %arg3[%c3, %c0_39, %c0_40] : memref<9x64x64xbf16, #tpu.memory_space<vmem>>, vector<1x64x64xbf16>
    %143 = vector.shape_cast %142 : vector<1x64x64xbf16> to vector<64x64xbf16>
    %144 = arith.truncf %141 : vector<8x64xf32> to vector<8x64xbf16>
    %cst_41 = arith.constant dense<0.000000e+00> : vector<8x64xf32>
    %145 = tpu.matmul %144, %143, %cst_41 {dimension_numbers = #tpu.dot_dimension_numbers<[1], [0], [0], [1], [0, 0, 1, 1], [], []>} : vector<8x64xbf16>, vector<64x64xbf16>, vector<8x64xf32> -> vector<8x64xf32>
    %146 = arith.addf %145, %30 : vector<8x64xf32>
    %147 = arith.addf %146, %117 : vector<8x64xf32>
    %148 = arith.negf %147 : vector<8x64xf32>
    %149 = math.exp %148 : vector<8x64xf32>
    %cst_42 = arith.constant 1.000000e+00 : f32
    %150 = vector.broadcast %cst_42 : f32 to vector<8x64xf32>
    %151 = arith.addf %150, %149 : vector<8x64xf32>
    %152 = arith.divf %150, %151 : vector<8x64xf32>
    %c4 = arith.constant 4 : index
    %c0_43 = arith.constant 0 : index
    %c0_44 = arith.constant 0 : index
    %153 = vector.load %arg3[%c4, %c0_43, %c0_44] : memref<9x64x64xbf16, #tpu.memory_space<vmem>>, vector<1x64x64xbf16>
    %154 = vector.shape_cast %153 : vector<1x64x64xbf16> to vector<64x64xbf16>
    %155 = arith.truncf %141 : vector<8x64xf32> to vector<8x64xbf16>
    %cst_45 = arith.constant dense<0.000000e+00> : vector<8x64xf32>
    %156 = tpu.matmul %155, %154, %cst_45 {dimension_numbers = #tpu.dot_dimension_numbers<[1], [0], [0], [1], [0, 0, 1, 1], [], []>} : vector<8x64xbf16>, vector<64x64xbf16>, vector<8x64xf32> -> vector<8x64xf32>
    %157 = arith.addf %156, %33 : vector<8x64xf32>
    %158 = arith.addf %157, %122 : vector<8x64xf32>
    %159 = arith.negf %158 : vector<8x64xf32>
    %160 = math.exp %159 : vector<8x64xf32>
    %cst_46 = arith.constant 1.000000e+00 : f32
    %161 = vector.broadcast %cst_46 : f32 to vector<8x64xf32>
    %162 = arith.addf %161, %160 : vector<8x64xf32>
    %163 = arith.divf %161, %162 : vector<8x64xf32>
    %c5 = arith.constant 5 : index
    %c0_47 = arith.constant 0 : index
    %c0_48 = arith.constant 0 : index
    %164 = vector.load %arg3[%c5, %c0_47, %c0_48] : memref<9x64x64xbf16, #tpu.memory_space<vmem>>, vector<1x64x64xbf16>
    %165 = vector.shape_cast %164 : vector<1x64x64xbf16> to vector<64x64xbf16>
    %166 = arith.truncf %141 : vector<8x64xf32> to vector<8x64xbf16>
    %cst_49 = arith.constant dense<0.000000e+00> : vector<8x64xf32>
    %167 = tpu.matmul %166, %165, %cst_49 {dimension_numbers = #tpu.dot_dimension_numbers<[1], [0], [0], [1], [0, 0, 1, 1], [], []>} : vector<8x64xbf16>, vector<64x64xbf16>, vector<8x64xf32> -> vector<8x64xf32>
    %168 = arith.addf %167, %36 : vector<8x64xf32>
    %169 = arith.mulf %152, %127 : vector<8x64xf32>
    %170 = arith.addf %168, %169 : vector<8x64xf32>
    %171 = math.tanh %170 : vector<8x64xf32>
    %cst_50 = arith.constant 1.000000e+00 : f32
    %172 = vector.broadcast %cst_50 : f32 to vector<8x64xf32>
    %173 = arith.subf %172, %163 : vector<8x64xf32>
    %174 = arith.mulf %173, %171 : vector<8x64xf32>
    %175 = arith.mulf %163, %87 : vector<8x64xf32>
    %176 = arith.addf %174, %175 : vector<8x64xf32>
    %cst_51 = arith.constant dense<0.000000e+00> : vector<8xf32>
    %177 = vector.multi_reduction <add>, %176, %cst_51 [1] : vector<8x64xf32> to vector<8xf32>
    %178 = vector.shape_cast %177 : vector<8xf32> to vector<8x1xf32>
    %cst_52 = arith.constant 6.400000e+01 : f32
    %179 = vector.broadcast %cst_52 : f32 to vector<8x1xf32>
    %180 = arith.divf %178, %179 : vector<8x1xf32>
    %181 = vector.broadcast %180 : vector<8x1xf32> to vector<8x64xf32>
    %182 = arith.subf %176, %181 : vector<8x64xf32>
    %183 = arith.mulf %182, %182 : vector<8x64xf32>
    %cst_53 = arith.constant dense<0.000000e+00> : vector<8xf32>
    %184 = vector.multi_reduction <add>, %183, %cst_53 [1] : vector<8x64xf32> to vector<8xf32>
    %185 = vector.shape_cast %184 : vector<8xf32> to vector<8x1xf32>
    %cst_54 = arith.constant 6.400000e+01 : f32
    %186 = vector.broadcast %cst_54 : f32 to vector<8x1xf32>
    %187 = arith.divf %185, %186 : vector<8x1xf32>
    %188 = vector.broadcast %180 : vector<8x1xf32> to vector<8x64xf32>
    %189 = arith.subf %176, %188 : vector<8x64xf32>
    %cst_55 = arith.constant 9.99999974E-6 : f32
    %190 = vector.broadcast %cst_55 : f32 to vector<8x1xf32>
    %191 = arith.addf %187, %190 : vector<8x1xf32>
    %192 = math.rsqrt %191 : vector<8x1xf32>
    %193 = vector.broadcast %192 : vector<8x1xf32> to vector<8x64xf32>
    %194 = arith.mulf %189, %193 : vector<8x64xf32>
    %195 = arith.mulf %194, %15 : vector<8x64xf32>
    %196 = arith.addf %195, %18 : vector<8x64xf32>
    %c0_56 = arith.constant 0 : index
    %c0_57 = arith.constant 0 : index
    %197 = vector.load %arg4[%c0_56, %c0_57] : memref<192x128xbf16, #tpu.memory_space<vmem>>, vector<64x128xbf16>
    %c64 = arith.constant 64 : index
    %c0_58 = arith.constant 0 : index
    %198 = vector.load %arg4[%c64, %c0_58] : memref<192x128xbf16, #tpu.memory_space<vmem>>, vector<128x64xbf16>
    %199 = arith.truncf %196 : vector<8x64xf32> to vector<8x64xbf16>
    %cst_59 = arith.constant dense<0.000000e+00> : vector<8x128xf32>
    %200 = tpu.matmul %199, %197, %cst_59 {dimension_numbers = #tpu.dot_dimension_numbers<[1], [0], [0], [1], [0, 0, 1, 1], [], []>} : vector<8x64xbf16>, vector<64x128xbf16>, vector<8x128xf32> -> vector<8x128xf32>
    %201 = arith.addf %200, %51 : vector<8x128xf32>
    %cst_60 = arith.constant 0.000000e+00 : f32
    %202 = vector.broadcast %cst_60 : f32 to vector<8x128xf32>
    %203 = arith.maximumf %201, %202 : vector<8x128xf32>
    %204 = arith.truncf %203 : vector<8x128xf32> to vector<8x128xbf16>
    %cst_61 = arith.constant dense<0.000000e+00> : vector<8x64xf32>
    %205 = tpu.matmul %204, %198, %cst_61 {dimension_numbers = #tpu.dot_dimension_numbers<[1], [0], [0], [1], [0, 0, 1, 1], [], []>} : vector<8x128xbf16>, vector<128x64xbf16>, vector<8x64xf32> -> vector<8x64xf32>
    %206 = arith.addf %176, %205 : vector<8x64xf32>
    %207 = arith.addf %206, %48 : vector<8x64xf32>
    %cst_62 = arith.constant dense<0.000000e+00> : vector<8xf32>
    %208 = vector.multi_reduction <add>, %207, %cst_62 [1] : vector<8x64xf32> to vector<8xf32>
    %209 = vector.shape_cast %208 : vector<8xf32> to vector<8x1xf32>
    %cst_63 = arith.constant 6.400000e+01 : f32
    %210 = vector.broadcast %cst_63 : f32 to vector<8x1xf32>
    %211 = arith.divf %209, %210 : vector<8x1xf32>
    %212 = vector.broadcast %211 : vector<8x1xf32> to vector<8x64xf32>
    %213 = arith.subf %207, %212 : vector<8x64xf32>
    %214 = arith.mulf %213, %213 : vector<8x64xf32>
    %cst_64 = arith.constant dense<0.000000e+00> : vector<8xf32>
    %215 = vector.multi_reduction <add>, %214, %cst_64 [1] : vector<8x64xf32> to vector<8xf32>
    %216 = vector.shape_cast %215 : vector<8xf32> to vector<8x1xf32>
    %cst_65 = arith.constant 6.400000e+01 : f32
    %217 = vector.broadcast %cst_65 : f32 to vector<8x1xf32>
    %218 = arith.divf %216, %217 : vector<8x1xf32>
    %219 = vector.broadcast %211 : vector<8x1xf32> to vector<8x64xf32>
    %220 = arith.subf %207, %219 : vector<8x64xf32>
    %cst_66 = arith.constant 9.99999974E-6 : f32
    %221 = vector.broadcast %cst_66 : f32 to vector<8x1xf32>
    %222 = arith.addf %218, %221 : vector<8x1xf32>
    %223 = math.rsqrt %222 : vector<8x1xf32>
    %224 = vector.broadcast %223 : vector<8x1xf32> to vector<8x64xf32>
    %225 = arith.mulf %220, %224 : vector<8x64xf32>
    %226 = arith.mulf %225, %9 : vector<8x64xf32>
    %227 = arith.addf %226, %12 : vector<8x64xf32>
    %c0_67 = arith.constant 0 : index
    %c0_68 = arith.constant 0 : index
    %c0_69 = arith.constant 0 : index
    %228 = vector.load %arg3[%c0_67, %c0_68, %c0_69] : memref<9x64x64xbf16, #tpu.memory_space<vmem>>, vector<1x64x64xbf16>
    %229 = vector.shape_cast %228 : vector<1x64x64xbf16> to vector<64x64xbf16>
    %230 = arith.truncf %227 : vector<8x64xf32> to vector<8x64xbf16>
    %cst_70 = arith.constant dense<0.000000e+00> : vector<8x64xf32>
    %231 = tpu.matmul %230, %229, %cst_70 {dimension_numbers = #tpu.dot_dimension_numbers<[1], [0], [0], [1], [0, 0, 1, 1], [], []>} : vector<8x64xbf16>, vector<64x64xbf16>, vector<8x64xf32> -> vector<8x64xf32>
    %232 = arith.addf %231, %21 : vector<8x64xf32>
    %c6_71 = arith.constant 6 : index
    %c0_72 = arith.constant 0 : index
    %c0_73 = arith.constant 0 : index
    %233 = vector.load %arg3[%c6_71, %c0_72, %c0_73] : memref<9x64x64xbf16, #tpu.memory_space<vmem>>, vector<1x64x64xbf16>
    %234 = vector.shape_cast %233 : vector<1x64x64xbf16> to vector<64x64xbf16>
    %235 = arith.truncf %207 : vector<8x64xf32> to vector<8x64xbf16>
    %cst_74 = arith.constant dense<0.000000e+00> : vector<8x64xf32>
    %236 = tpu.matmul %235, %234, %cst_74 {dimension_numbers = #tpu.dot_dimension_numbers<[1], [0], [0], [1], [0, 0, 1, 1], [], []>} : vector<8x64xbf16>, vector<64x64xbf16>, vector<8x64xf32> -> vector<8x64xf32>
    %237 = arith.addf %236, %39 : vector<8x64xf32>
    %c7_75 = arith.constant 7 : index
    %c0_76 = arith.constant 0 : index
    %c0_77 = arith.constant 0 : index
    %238 = vector.load %arg3[%c7_75, %c0_76, %c0_77] : memref<9x64x64xbf16, #tpu.memory_space<vmem>>, vector<1x64x64xbf16>
    %239 = vector.shape_cast %238 : vector<1x64x64xbf16> to vector<64x64xbf16>
    %240 = arith.truncf %207 : vector<8x64xf32> to vector<8x64xbf16>
    %cst_78 = arith.constant dense<0.000000e+00> : vector<8x64xf32>
    %241 = tpu.matmul %240, %239, %cst_78 {dimension_numbers = #tpu.dot_dimension_numbers<[1], [0], [0], [1], [0, 0, 1, 1], [], []>} : vector<8x64xbf16>, vector<64x64xbf16>, vector<8x64xf32> -> vector<8x64xf32>
    %242 = arith.addf %241, %42 : vector<8x64xf32>
    %c8_79 = arith.constant 8 : index
    %c0_80 = arith.constant 0 : index
    %c0_81 = arith.constant 0 : index
    %243 = vector.load %arg3[%c8_79, %c0_80, %c0_81] : memref<9x64x64xbf16, #tpu.memory_space<vmem>>, vector<1x64x64xbf16>
    %244 = vector.shape_cast %243 : vector<1x64x64xbf16> to vector<64x64xbf16>
    %245 = arith.truncf %207 : vector<8x64xf32> to vector<8x64xbf16>
    %cst_82 = arith.constant dense<0.000000e+00> : vector<8x64xf32>
    %246 = tpu.matmul %245, %244, %cst_82 {dimension_numbers = #tpu.dot_dimension_numbers<[1], [0], [0], [1], [0, 0, 1, 1], [], []>} : vector<8x64xbf16>, vector<64x64xbf16>, vector<8x64xf32> -> vector<8x64xf32>
    %247 = arith.addf %246, %45 : vector<8x64xf32>
    %248 = arith.truncf %232 : vector<8x64xf32> to vector<8x64xbf16>
    %cst_83 = arith.constant dense<0.000000e+00> : vector<8x16xf32>
    %249 = tpu.matmul %248, %79, %cst_83 {dimension_numbers = #tpu.dot_dimension_numbers<[1], [1], [0], [0], [0, 0, 1, 0], [], []>} : vector<8x64xbf16>, vector<16x64xbf16>, vector<8x16xf32> -> vector<8x16xf32>
    %cst_84 = arith.constant dense<0xFF800000> : vector<8xf32>
    %250 = vector.multi_reduction <maximumf>, %249, %cst_84 [1] : vector<8x16xf32> to vector<8xf32>
    %251 = vector.shape_cast %250 : vector<8xf32> to vector<8x1xf32>
    %252 = vector.broadcast %251 : vector<8x1xf32> to vector<8x16xf32>
    %253 = arith.subf %249, %252 : vector<8x16xf32>
    %254 = math.exp %253 : vector<8x16xf32>
    %cst_85 = arith.constant dense<0.000000e+00> : vector<8xf32>
    %255 = vector.multi_reduction <add>, %254, %cst_85 [1] : vector<8x16xf32> to vector<8xf32>
    %256 = vector.shape_cast %255 : vector<8xf32> to vector<8x1xf32>
    %257 = tpu.reciprocal %256 : vector<8x1xf32> -> vector<8x1xf32>
    %258 = vector.broadcast %257 : vector<8x1xf32> to vector<8x16xf32>
    %259 = arith.mulf %254, %258 : vector<8x16xf32>
    %260 = arith.truncf %259 : vector<8x16xf32> to vector<8x16xbf16>
    %cst_86 = arith.constant dense<0.000000e+00> : vector<8x64xf32>
    %261 = tpu.matmul %260, %85, %cst_86 {dimension_numbers = #tpu.dot_dimension_numbers<[1], [0], [0], [1], [0, 0, 1, 1], [], []>} : vector<8x16xbf16>, vector<16x64xbf16>, vector<8x64xf32> -> vector<8x64xf32>
    %c3_87 = arith.constant 3 : index
    %c0_88 = arith.constant 0 : index
    %c0_89 = arith.constant 0 : index
    %262 = vector.load %arg3[%c3_87, %c0_88, %c0_89] : memref<9x64x64xbf16, #tpu.memory_space<vmem>>, vector<1x64x64xbf16>
    %263 = vector.shape_cast %262 : vector<1x64x64xbf16> to vector<64x64xbf16>
    %264 = arith.truncf %261 : vector<8x64xf32> to vector<8x64xbf16>
    %cst_90 = arith.constant dense<0.000000e+00> : vector<8x64xf32>
    %265 = tpu.matmul %264, %263, %cst_90 {dimension_numbers = #tpu.dot_dimension_numbers<[1], [0], [0], [1], [0, 0, 1, 1], [], []>} : vector<8x64xbf16>, vector<64x64xbf16>, vector<8x64xf32> -> vector<8x64xf32>
    %266 = arith.addf %265, %30 : vector<8x64xf32>
    %267 = arith.addf %266, %237 : vector<8x64xf32>
    %268 = arith.negf %267 : vector<8x64xf32>
    %269 = math.exp %268 : vector<8x64xf32>
    %cst_91 = arith.constant 1.000000e+00 : f32
    %270 = vector.broadcast %cst_91 : f32 to vector<8x64xf32>
    %271 = arith.addf %270, %269 : vector<8x64xf32>
    %272 = arith.divf %270, %271 : vector<8x64xf32>
    %c4_92 = arith.constant 4 : index
    %c0_93 = arith.constant 0 : index
    %c0_94 = arith.constant 0 : index
    %273 = vector.load %arg3[%c4_92, %c0_93, %c0_94] : memref<9x64x64xbf16, #tpu.memory_space<vmem>>, vector<1x64x64xbf16>
    %274 = vector.shape_cast %273 : vector<1x64x64xbf16> to vector<64x64xbf16>
    %275 = arith.truncf %261 : vector<8x64xf32> to vector<8x64xbf16>
    %cst_95 = arith.constant dense<0.000000e+00> : vector<8x64xf32>
    %276 = tpu.matmul %275, %274, %cst_95 {dimension_numbers = #tpu.dot_dimension_numbers<[1], [0], [0], [1], [0, 0, 1, 1], [], []>} : vector<8x64xbf16>, vector<64x64xbf16>, vector<8x64xf32> -> vector<8x64xf32>
    %277 = arith.addf %276, %33 : vector<8x64xf32>
    %278 = arith.addf %277, %242 : vector<8x64xf32>
    %279 = arith.negf %278 : vector<8x64xf32>
    %280 = math.exp %279 : vector<8x64xf32>
    %cst_96 = arith.constant 1.000000e+00 : f32
    %281 = vector.broadcast %cst_96 : f32 to vector<8x64xf32>
    %282 = arith.addf %281, %280 : vector<8x64xf32>
    %283 = arith.divf %281, %282 : vector<8x64xf32>
    %c5_97 = arith.constant 5 : index
    %c0_98 = arith.constant 0 : index
    %c0_99 = arith.constant 0 : index
    %284 = vector.load %arg3[%c5_97, %c0_98, %c0_99] : memref<9x64x64xbf16, #tpu.memory_space<vmem>>, vector<1x64x64xbf16>
    %285 = vector.shape_cast %284 : vector<1x64x64xbf16> to vector<64x64xbf16>
    %286 = arith.truncf %261 : vector<8x64xf32> to vector<8x64xbf16>
    %cst_100 = arith.constant dense<0.000000e+00> : vector<8x64xf32>
    %287 = tpu.matmul %286, %285, %cst_100 {dimension_numbers = #tpu.dot_dimension_numbers<[1], [0], [0], [1], [0, 0, 1, 1], [], []>} : vector<8x64xbf16>, vector<64x64xbf16>, vector<8x64xf32> -> vector<8x64xf32>
    %288 = arith.addf %287, %36 : vector<8x64xf32>
    %289 = arith.mulf %272, %247 : vector<8x64xf32>
    %290 = arith.addf %288, %289 : vector<8x64xf32>
    %291 = math.tanh %290 : vector<8x64xf32>
    %cst_101 = arith.constant 1.000000e+00 : f32
    %292 = vector.broadcast %cst_101 : f32 to vector<8x64xf32>
    %293 = arith.subf %292, %283 : vector<8x64xf32>
    %294 = arith.mulf %293, %291 : vector<8x64xf32>
    %295 = arith.mulf %283, %207 : vector<8x64xf32>
    %296 = arith.addf %294, %295 : vector<8x64xf32>
    %cst_102 = arith.constant dense<0.000000e+00> : vector<8xf32>
    %297 = vector.multi_reduction <add>, %296, %cst_102 [1] : vector<8x64xf32> to vector<8xf32>
    %298 = vector.shape_cast %297 : vector<8xf32> to vector<8x1xf32>
    %cst_103 = arith.constant 6.400000e+01 : f32
    %299 = vector.broadcast %cst_103 : f32 to vector<8x1xf32>
    %300 = arith.divf %298, %299 : vector<8x1xf32>
    %301 = vector.broadcast %300 : vector<8x1xf32> to vector<8x64xf32>
    %302 = arith.subf %296, %301 : vector<8x64xf32>
    %303 = arith.mulf %302, %302 : vector<8x64xf32>
    %cst_104 = arith.constant dense<0.000000e+00> : vector<8xf32>
    %304 = vector.multi_reduction <add>, %303, %cst_104 [1] : vector<8x64xf32> to vector<8xf32>
    %305 = vector.shape_cast %304 : vector<8xf32> to vector<8x1xf32>
    %cst_105 = arith.constant 6.400000e+01 : f32
    %306 = vector.broadcast %cst_105 : f32 to vector<8x1xf32>
    %307 = arith.divf %305, %306 : vector<8x1xf32>
    %308 = vector.broadcast %300 : vector<8x1xf32> to vector<8x64xf32>
    %309 = arith.subf %296, %308 : vector<8x64xf32>
    %cst_106 = arith.constant 9.99999974E-6 : f32
    %310 = vector.broadcast %cst_106 : f32 to vector<8x1xf32>
    %311 = arith.addf %307, %310 : vector<8x1xf32>
    %312 = math.rsqrt %311 : vector<8x1xf32>
    %313 = vector.broadcast %312 : vector<8x1xf32> to vector<8x64xf32>
    %314 = arith.mulf %309, %313 : vector<8x64xf32>
    %315 = arith.mulf %314, %15 : vector<8x64xf32>
    %316 = arith.addf %315, %18 : vector<8x64xf32>
    %c0_107 = arith.constant 0 : index
    %c0_108 = arith.constant 0 : index
    %317 = vector.load %arg4[%c0_107, %c0_108] : memref<192x128xbf16, #tpu.memory_space<vmem>>, vector<64x128xbf16>
    %c64_109 = arith.constant 64 : index
    %c0_110 = arith.constant 0 : index
    %318 = vector.load %arg4[%c64_109, %c0_110] : memref<192x128xbf16, #tpu.memory_space<vmem>>, vector<128x64xbf16>
    %319 = arith.truncf %316 : vector<8x64xf32> to vector<8x64xbf16>
    %cst_111 = arith.constant dense<0.000000e+00> : vector<8x128xf32>
    %320 = tpu.matmul %319, %317, %cst_111 {dimension_numbers = #tpu.dot_dimension_numbers<[1], [0], [0], [1], [0, 0, 1, 1], [], []>} : vector<8x64xbf16>, vector<64x128xbf16>, vector<8x128xf32> -> vector<8x128xf32>
    %321 = arith.addf %320, %51 : vector<8x128xf32>
    %cst_112 = arith.constant 0.000000e+00 : f32
    %322 = vector.broadcast %cst_112 : f32 to vector<8x128xf32>
    %323 = arith.maximumf %321, %322 : vector<8x128xf32>
    %324 = arith.truncf %323 : vector<8x128xf32> to vector<8x128xbf16>
    %cst_113 = arith.constant dense<0.000000e+00> : vector<8x64xf32>
    %325 = tpu.matmul %324, %318, %cst_113 {dimension_numbers = #tpu.dot_dimension_numbers<[1], [0], [0], [1], [0, 0, 1, 1], [], []>} : vector<8x128xbf16>, vector<128x64xbf16>, vector<8x64xf32> -> vector<8x64xf32>
    %326 = arith.addf %296, %325 : vector<8x64xf32>
    %327 = arith.addf %326, %48 : vector<8x64xf32>
    %cst_114 = arith.constant dense<0.000000e+00> : vector<8xf32>
    %328 = vector.multi_reduction <add>, %327, %cst_114 [1] : vector<8x64xf32> to vector<8xf32>
    %329 = vector.shape_cast %328 : vector<8xf32> to vector<8x1xf32>
    %cst_115 = arith.constant 6.400000e+01 : f32
    %330 = vector.broadcast %cst_115 : f32 to vector<8x1xf32>
    %331 = arith.divf %329, %330 : vector<8x1xf32>
    %332 = vector.broadcast %331 : vector<8x1xf32> to vector<8x64xf32>
    %333 = arith.subf %327, %332 : vector<8x64xf32>
    %334 = arith.mulf %333, %333 : vector<8x64xf32>
    %cst_116 = arith.constant dense<0.000000e+00> : vector<8xf32>
    %335 = vector.multi_reduction <add>, %334, %cst_116 [1] : vector<8x64xf32> to vector<8xf32>
    %336 = vector.shape_cast %335 : vector<8xf32> to vector<8x1xf32>
    %cst_117 = arith.constant 6.400000e+01 : f32
    %337 = vector.broadcast %cst_117 : f32 to vector<8x1xf32>
    %338 = arith.divf %336, %337 : vector<8x1xf32>
    %339 = vector.broadcast %331 : vector<8x1xf32> to vector<8x64xf32>
    %340 = arith.subf %327, %339 : vector<8x64xf32>
    %cst_118 = arith.constant 9.99999974E-6 : f32
    %341 = vector.broadcast %cst_118 : f32 to vector<8x1xf32>
    %342 = arith.addf %338, %341 : vector<8x1xf32>
    %343 = math.rsqrt %342 : vector<8x1xf32>
    %344 = vector.broadcast %343 : vector<8x1xf32> to vector<8x64xf32>
    %345 = arith.mulf %340, %344 : vector<8x64xf32>
    %346 = arith.mulf %345, %9 : vector<8x64xf32>
    %347 = arith.addf %346, %12 : vector<8x64xf32>
    %c0_119 = arith.constant 0 : index
    %c0_120 = arith.constant 0 : index
    %c0_121 = arith.constant 0 : index
    %348 = vector.load %arg3[%c0_119, %c0_120, %c0_121] : memref<9x64x64xbf16, #tpu.memory_space<vmem>>, vector<1x64x64xbf16>
    %349 = vector.shape_cast %348 : vector<1x64x64xbf16> to vector<64x64xbf16>
    %350 = arith.truncf %347 : vector<8x64xf32> to vector<8x64xbf16>
    %cst_122 = arith.constant dense<0.000000e+00> : vector<8x64xf32>
    %351 = tpu.matmul %350, %349, %cst_122 {dimension_numbers = #tpu.dot_dimension_numbers<[1], [0], [0], [1], [0, 0, 1, 1], [], []>} : vector<8x64xbf16>, vector<64x64xbf16>, vector<8x64xf32> -> vector<8x64xf32>
    %352 = arith.addf %351, %21 : vector<8x64xf32>
    %c6_123 = arith.constant 6 : index
    %c0_124 = arith.constant 0 : index
    %c0_125 = arith.constant 0 : index
    %353 = vector.load %arg3[%c6_123, %c0_124, %c0_125] : memref<9x64x64xbf16, #tpu.memory_space<vmem>>, vector<1x64x64xbf16>
    %354 = vector.shape_cast %353 : vector<1x64x64xbf16> to vector<64x64xbf16>
    %355 = arith.truncf %327 : vector<8x64xf32> to vector<8x64xbf16>
    %cst_126 = arith.constant dense<0.000000e+00> : vector<8x64xf32>
    %356 = tpu.matmul %355, %354, %cst_126 {dimension_numbers = #tpu.dot_dimension_numbers<[1], [0], [0], [1], [0, 0, 1, 1], [], []>} : vector<8x64xbf16>, vector<64x64xbf16>, vector<8x64xf32> -> vector<8x64xf32>
    %357 = arith.addf %356, %39 : vector<8x64xf32>
    %c7_127 = arith.constant 7 : index
    %c0_128 = arith.constant 0 : index
    %c0_129 = arith.constant 0 : index
    %358 = vector.load %arg3[%c7_127, %c0_128, %c0_129] : memref<9x64x64xbf16, #tpu.memory_space<vmem>>, vector<1x64x64xbf16>
    %359 = vector.shape_cast %358 : vector<1x64x64xbf16> to vector<64x64xbf16>
    %360 = arith.truncf %327 : vector<8x64xf32> to vector<8x64xbf16>
    %cst_130 = arith.constant dense<0.000000e+00> : vector<8x64xf32>
    %361 = tpu.matmul %360, %359, %cst_130 {dimension_numbers = #tpu.dot_dimension_numbers<[1], [0], [0], [1], [0, 0, 1, 1], [], []>} : vector<8x64xbf16>, vector<64x64xbf16>, vector<8x64xf32> -> vector<8x64xf32>
    %362 = arith.addf %361, %42 : vector<8x64xf32>
    %c8_131 = arith.constant 8 : index
    %c0_132 = arith.constant 0 : index
    %c0_133 = arith.constant 0 : index
    %363 = vector.load %arg3[%c8_131, %c0_132, %c0_133] : memref<9x64x64xbf16, #tpu.memory_space<vmem>>, vector<1x64x64xbf16>
    %364 = vector.shape_cast %363 : vector<1x64x64xbf16> to vector<64x64xbf16>
    %365 = arith.truncf %327 : vector<8x64xf32> to vector<8x64xbf16>
    %cst_134 = arith.constant dense<0.000000e+00> : vector<8x64xf32>
    %366 = tpu.matmul %365, %364, %cst_134 {dimension_numbers = #tpu.dot_dimension_numbers<[1], [0], [0], [1], [0, 0, 1, 1], [], []>} : vector<8x64xbf16>, vector<64x64xbf16>, vector<8x64xf32> -> vector<8x64xf32>
    %367 = arith.addf %366, %45 : vector<8x64xf32>
    %368 = arith.truncf %352 : vector<8x64xf32> to vector<8x64xbf16>
    %cst_135 = arith.constant dense<0.000000e+00> : vector<8x16xf32>
    %369 = tpu.matmul %368, %79, %cst_135 {dimension_numbers = #tpu.dot_dimension_numbers<[1], [1], [0], [0], [0, 0, 1, 0], [], []>} : vector<8x64xbf16>, vector<16x64xbf16>, vector<8x16xf32> -> vector<8x16xf32>
    %cst_136 = arith.constant dense<0xFF800000> : vector<8xf32>
    %370 = vector.multi_reduction <maximumf>, %369, %cst_136 [1] : vector<8x16xf32> to vector<8xf32>
    %371 = vector.shape_cast %370 : vector<8xf32> to vector<8x1xf32>
    %372 = vector.broadcast %371 : vector<8x1xf32> to vector<8x16xf32>
    %373 = arith.subf %369, %372 : vector<8x16xf32>
    %374 = math.exp %373 : vector<8x16xf32>
    %cst_137 = arith.constant dense<0.000000e+00> : vector<8xf32>
    %375 = vector.multi_reduction <add>, %374, %cst_137 [1] : vector<8x16xf32> to vector<8xf32>
    %376 = vector.shape_cast %375 : vector<8xf32> to vector<8x1xf32>
    %377 = tpu.reciprocal %376 : vector<8x1xf32> -> vector<8x1xf32>
    %378 = vector.broadcast %377 : vector<8x1xf32> to vector<8x16xf32>
    %379 = arith.mulf %374, %378 : vector<8x16xf32>
    %380 = arith.truncf %379 : vector<8x16xf32> to vector<8x16xbf16>
    %cst_138 = arith.constant dense<0.000000e+00> : vector<8x64xf32>
    %381 = tpu.matmul %380, %85, %cst_138 {dimension_numbers = #tpu.dot_dimension_numbers<[1], [0], [0], [1], [0, 0, 1, 1], [], []>} : vector<8x16xbf16>, vector<16x64xbf16>, vector<8x64xf32> -> vector<8x64xf32>
    %c3_139 = arith.constant 3 : index
    %c0_140 = arith.constant 0 : index
    %c0_141 = arith.constant 0 : index
    %382 = vector.load %arg3[%c3_139, %c0_140, %c0_141] : memref<9x64x64xbf16, #tpu.memory_space<vmem>>, vector<1x64x64xbf16>
    %383 = vector.shape_cast %382 : vector<1x64x64xbf16> to vector<64x64xbf16>
    %384 = arith.truncf %381 : vector<8x64xf32> to vector<8x64xbf16>
    %cst_142 = arith.constant dense<0.000000e+00> : vector<8x64xf32>
    %385 = tpu.matmul %384, %383, %cst_142 {dimension_numbers = #tpu.dot_dimension_numbers<[1], [0], [0], [1], [0, 0, 1, 1], [], []>} : vector<8x64xbf16>, vector<64x64xbf16>, vector<8x64xf32> -> vector<8x64xf32>
    %386 = arith.addf %385, %30 : vector<8x64xf32>
    %387 = arith.addf %386, %357 : vector<8x64xf32>
    %388 = arith.negf %387 : vector<8x64xf32>
    %389 = math.exp %388 : vector<8x64xf32>
    %cst_143 = arith.constant 1.000000e+00 : f32
    %390 = vector.broadcast %cst_143 : f32 to vector<8x64xf32>
    %391 = arith.addf %390, %389 : vector<8x64xf32>
    %392 = arith.divf %390, %391 : vector<8x64xf32>
    %c4_144 = arith.constant 4 : index
    %c0_145 = arith.constant 0 : index
    %c0_146 = arith.constant 0 : index
    %393 = vector.load %arg3[%c4_144, %c0_145, %c0_146] : memref<9x64x64xbf16, #tpu.memory_space<vmem>>, vector<1x64x64xbf16>
    %394 = vector.shape_cast %393 : vector<1x64x64xbf16> to vector<64x64xbf16>
    %395 = arith.truncf %381 : vector<8x64xf32> to vector<8x64xbf16>
    %cst_147 = arith.constant dense<0.000000e+00> : vector<8x64xf32>
    %396 = tpu.matmul %395, %394, %cst_147 {dimension_numbers = #tpu.dot_dimension_numbers<[1], [0], [0], [1], [0, 0, 1, 1], [], []>} : vector<8x64xbf16>, vector<64x64xbf16>, vector<8x64xf32> -> vector<8x64xf32>
    %397 = arith.addf %396, %33 : vector<8x64xf32>
    %398 = arith.addf %397, %362 : vector<8x64xf32>
    %399 = arith.negf %398 : vector<8x64xf32>
    %400 = math.exp %399 : vector<8x64xf32>
    %cst_148 = arith.constant 1.000000e+00 : f32
    %401 = vector.broadcast %cst_148 : f32 to vector<8x64xf32>
    %402 = arith.addf %401, %400 : vector<8x64xf32>
    %403 = arith.divf %401, %402 : vector<8x64xf32>
    %c5_149 = arith.constant 5 : index
    %c0_150 = arith.constant 0 : index
    %c0_151 = arith.constant 0 : index
    %404 = vector.load %arg3[%c5_149, %c0_150, %c0_151] : memref<9x64x64xbf16, #tpu.memory_space<vmem>>, vector<1x64x64xbf16>
    %405 = vector.shape_cast %404 : vector<1x64x64xbf16> to vector<64x64xbf16>
    %406 = arith.truncf %381 : vector<8x64xf32> to vector<8x64xbf16>
    %cst_152 = arith.constant dense<0.000000e+00> : vector<8x64xf32>
    %407 = tpu.matmul %406, %405, %cst_152 {dimension_numbers = #tpu.dot_dimension_numbers<[1], [0], [0], [1], [0, 0, 1, 1], [], []>} : vector<8x64xbf16>, vector<64x64xbf16>, vector<8x64xf32> -> vector<8x64xf32>
    %408 = arith.addf %407, %36 : vector<8x64xf32>
    %409 = arith.mulf %392, %367 : vector<8x64xf32>
    %410 = arith.addf %408, %409 : vector<8x64xf32>
    %411 = math.tanh %410 : vector<8x64xf32>
    %cst_153 = arith.constant 1.000000e+00 : f32
    %412 = vector.broadcast %cst_153 : f32 to vector<8x64xf32>
    %413 = arith.subf %412, %403 : vector<8x64xf32>
    %414 = arith.mulf %413, %411 : vector<8x64xf32>
    %415 = arith.mulf %403, %327 : vector<8x64xf32>
    %416 = arith.addf %414, %415 : vector<8x64xf32>
    %cst_154 = arith.constant dense<0.000000e+00> : vector<8xf32>
    %417 = vector.multi_reduction <add>, %416, %cst_154 [1] : vector<8x64xf32> to vector<8xf32>
    %418 = vector.shape_cast %417 : vector<8xf32> to vector<8x1xf32>
    %cst_155 = arith.constant 6.400000e+01 : f32
    %419 = vector.broadcast %cst_155 : f32 to vector<8x1xf32>
    %420 = arith.divf %418, %419 : vector<8x1xf32>
    %421 = vector.broadcast %420 : vector<8x1xf32> to vector<8x64xf32>
    %422 = arith.subf %416, %421 : vector<8x64xf32>
    %423 = arith.mulf %422, %422 : vector<8x64xf32>
    %cst_156 = arith.constant dense<0.000000e+00> : vector<8xf32>
    %424 = vector.multi_reduction <add>, %423, %cst_156 [1] : vector<8x64xf32> to vector<8xf32>
    %425 = vector.shape_cast %424 : vector<8xf32> to vector<8x1xf32>
    %cst_157 = arith.constant 6.400000e+01 : f32
    %426 = vector.broadcast %cst_157 : f32 to vector<8x1xf32>
    %427 = arith.divf %425, %426 : vector<8x1xf32>
    %428 = vector.broadcast %420 : vector<8x1xf32> to vector<8x64xf32>
    %429 = arith.subf %416, %428 : vector<8x64xf32>
    %cst_158 = arith.constant 9.99999974E-6 : f32
    %430 = vector.broadcast %cst_158 : f32 to vector<8x1xf32>
    %431 = arith.addf %427, %430 : vector<8x1xf32>
    %432 = math.rsqrt %431 : vector<8x1xf32>
    %433 = vector.broadcast %432 : vector<8x1xf32> to vector<8x64xf32>
    %434 = arith.mulf %429, %433 : vector<8x64xf32>
    %435 = arith.mulf %434, %15 : vector<8x64xf32>
    %436 = arith.addf %435, %18 : vector<8x64xf32>
    %c0_159 = arith.constant 0 : index
    %c0_160 = arith.constant 0 : index
    %437 = vector.load %arg4[%c0_159, %c0_160] : memref<192x128xbf16, #tpu.memory_space<vmem>>, vector<64x128xbf16>
    %c64_161 = arith.constant 64 : index
    %c0_162 = arith.constant 0 : index
    %438 = vector.load %arg4[%c64_161, %c0_162] : memref<192x128xbf16, #tpu.memory_space<vmem>>, vector<128x64xbf16>
    %439 = arith.truncf %436 : vector<8x64xf32> to vector<8x64xbf16>
    %cst_163 = arith.constant dense<0.000000e+00> : vector<8x128xf32>
    %440 = tpu.matmul %439, %437, %cst_163 {dimension_numbers = #tpu.dot_dimension_numbers<[1], [0], [0], [1], [0, 0, 1, 1], [], []>} : vector<8x64xbf16>, vector<64x128xbf16>, vector<8x128xf32> -> vector<8x128xf32>
    %441 = arith.addf %440, %51 : vector<8x128xf32>
    %cst_164 = arith.constant 0.000000e+00 : f32
    %442 = vector.broadcast %cst_164 : f32 to vector<8x128xf32>
    %443 = arith.maximumf %441, %442 : vector<8x128xf32>
    %444 = arith.truncf %443 : vector<8x128xf32> to vector<8x128xbf16>
    %cst_165 = arith.constant dense<0.000000e+00> : vector<8x64xf32>
    %445 = tpu.matmul %444, %438, %cst_165 {dimension_numbers = #tpu.dot_dimension_numbers<[1], [0], [0], [1], [0, 0, 1, 1], [], []>} : vector<8x128xbf16>, vector<128x64xbf16>, vector<8x64xf32> -> vector<8x64xf32>
    %446 = arith.addf %416, %445 : vector<8x64xf32>
    %447 = arith.addf %446, %48 : vector<8x64xf32>
    %c0_166 = arith.constant 0 : index
    %c0_167 = arith.constant 0 : index
    %c0_168 = arith.constant 0 : index
    %448 = vector.load %arg6[%c0_166, %c0_167, %c0_168] : memref<1x8x64xf32, #tpu.memory_space<vmem>>, vector<1x8x64xf32>
    %449 = vector.shape_cast %448 : vector<1x8x64xf32> to vector<8x64xf32>
    %450 = vector.shape_cast %447 : vector<8x64xf32> to vector<1x8x64xf32>
    tpu.vector_store %arg6[%c0_166, %c0_167, %c0_168], %450 {strides = array<i32>} : memref<1x8x64xf32, #tpu.memory_space<vmem>>, vector<1x8x64xf32>,
    return
  }
  func.func @transform_0(%arg0: i32) -> (i32, i32, i32) {
    %c0_i32 = arith.constant 0 : i32
    %c0_i32_0 = arith.constant 0 : i32
    %c0_i32_1 = arith.constant 0 : i32
    return %arg0, %c0_i32, %c0_i32_0 : i32, i32, i32
  }
  func.func @transform_1(%arg0: i32) -> (i32, i32, i32) {
    %c0_i32 = arith.constant 0 : i32
    %c0_i32_0 = arith.constant 0 : i32
    %c0_i32_1 = arith.constant 0 : i32
    return %arg0, %c0_i32, %c0_i32_0 : i32, i32, i32
  }
  func.func @transform_2(%arg0: i32) -> (i32, i32, i32) {
    %c0_i32 = arith.constant 0 : i32
    %c0_i32_0 = arith.constant 0 : i32
    %c0_i32_1 = arith.constant 0 : i32
    %c0_i32_2 = arith.constant 0 : i32
    return %c0_i32, %c0_i32_0, %c0_i32_1 : i32, i32, i32
  }
  func.func @transform_3(%arg0: i32) -> (i32, i32) {
    %c0_i32 = arith.constant 0 : i32
    %c0_i32_0 = arith.constant 0 : i32
    %c0_i32_1 = arith.constant 0 : i32
    return %c0_i32, %c0_i32_0 : i32, i32
  }
  func.func @transform_4(%arg0: i32) -> (i32, i32) {
    %c0_i32 = arith.constant 0 : i32
    %c0_i32_0 = arith.constant 0 : i32
    %c0_i32_1 = arith.constant 0 : i32
    return %c0_i32, %c0_i32_0 : i32, i32
  }
  func.func @transform_5(%arg0: i32) -> (i32, i32, i32) {
    %c0_i32 = arith.constant 0 : i32
    %c0_i32_0 = arith.constant 0 : i32
    %c0_i32_1 = arith.constant 0 : i32
    return %arg0, %c0_i32, %c0_i32_0 : i32, i32, i32
  }
}

</mosaic_0001>

<bundles_post_ra>
// kernel: tpu_custom_call.1
= control target key start
LH: loop header
LB: loop body
LE: loop exit
PB: predicated region body
PF: predicated region fallthrough
CT: control target
= control target key end

     0   :  { %10 = vsyncpa [#allocation3], 0  ;;  %s4567_s0 = inlined_call_operand.hbm [shape: f32[4,8,64], index: 0, kind: input, shape index: {}, may-alias: {0,5}]   ;;  %s4568_s1 = inlined_call_operand.vmem [shape: f32[4,16,64], index: 1, kind: input, shape index: {}]   ;;  %s4569_s2 = inlined_call_operand.hbm [shape: bf16[9,64,64], index: 2, kind: input, shape index: {}]   ;;  %s4570_s3 = inlined_call_operand.hbm [shape: bf16[192,128], index: 3, kind: input, shape index: {}]   ;;  %s4571_s4 = inlined_call_operand.hbm [shape: f32[17,128], index: 4, kind: input, shape index: {}]   ;;  %s4572_s5 = inlined_call_operand.hbm [shape: f32[4,8,64], index: 5, kind: output, shape index: {}, may-alias: {0,5}]  }
   0x1   :  { %12 = vsyncpa [#allocation3 + $0x1], 0 }
   0x2   :  { %13 = vsyncpa [#allocation6], 0 }
   0x3   :  { %14 = vsyncpa [#allocation9], 0 }
   0x4   :  { %15 = vsyncpa [#allocation4], 0 }
   0x5   :  { %17 = vsyncpa [#allocation4 + $0x1], 0  ;;  %s3721_s18 = smov 0   ;;  %s3723_s19 = smov 0  }
   0x6   :  { %s3725_s20 = smov 0   ;;  %s3727_s21 = smov 0  }
   0x7 LB: > { %s3742_s22 = sadd.s32 4294967295, %s3678_s21   ;;  %s2611_s23 = sadd.s32 4294967294, %s3678_s21   ;;  %s3678_s21 = sphi %s3727_s21, %s4612_s21   ;;  %s3674_s20 = sphi %s3725_s20, %s4611_s20   ;;  %s3670_s19 = sphi %s3723_s19, %s4610_s19   ;;  %s3666_s18 = sphi %s3721_s18, %s4609_s18  }
   0x8   : > { %p43_p0 = scmp.ne.s32.totalorder %s3670_s19, %s3666_s18  ;;  %p4573_p1 = scmp.eq.s32.totalorder %s3742_s22, 0 }
   0x9   : > { %p162_p3 = scmp.eq.s32.totalorder %s2611_s23, 3  ;;  %p2612_p5 = scmp.ge.s32.totalorder %s3678_s21, 1 }
   0xa   : > { %p3751_p4 = por %p4573_p1, %p43_p0  ;;  %p169_p7 = scmp.lt.s32.totalorder %s3678_s21, 5 }
   0xb   : > { %p3756_p6 = por %p162_p3, %p43_p0  ;;  %s3680_s27 = smov [#allocation5]  }
   0xc   : > { %s4586_s24 = scalar_select %p3751_p4, 1, 0 }
   0xd   : > { %s4587_s25 = scalar_select %p3756_p6, 1, 0 }
   0xe   : > { %p3761_p8 = pnand %p2612_p5, %p169_p7  ;;  %s181_s28 = sshll.u32 %s3680_s27, 4  ;;  %s182_s28 = int_to_ptr.vmem [resolvable:$true] %s181_s28 }
   0xf   : > { %s3681_s30 = smov [#allocation7]   ;;  %s3682_s7 = smov [#allocation8]  }
  0x10   : > { %s4588_s26 = scalar_select %p3761_p8, 1, 0 }
  0x11   : > { %p3312_p9 = pneg %p3761_p8  ;;  %s194_s6 = sshll.u32 %s3681_s30, 4  ;;  %s195_s6 = int_to_ptr.vmem [resolvable:$true] %s194_s6 }
  0x12   : > { %s207_s8 = sshll.u32 %s3682_s7, 4  ;;  %s3511_s9 = scalar_lea.vmem %s182_s28, 4608  ;;  %s208_s8 = int_to_ptr.vmem [resolvable:$true] %s207_s8 }
  0x13   : > { %p3769_p10 = pnand %p3312_p9, %p4573_p1  ;;  %p3512_p12 = scmp.ne.s32.totalorder %s182_s28, %s3511_s9 }
  0x14   : > { %p3519_p3 = scmp.lt.s32.totalorder %s182_s28, %s182_s28  ;;  %p3520_p5 = scmp.lt.s32.totalorder %s3511_s9, %s3511_s9 }
  0x15   : > { %p3502_p11 = pneg %p3769_p10 }
  0x16   : > { %p3521_p7 = por %p3520_p5, %p3519_p3 }
  0x17   : > { %p3514_p13 = pnand %p3512_p12, %p3502_p11 }
  0x19   : > { %p3515_p0 = pneg %p3514_p13 }
  0x1b   : > { %p3522_p9 = pnand %p3521_p7, %p3515_p0 }
  0x1d   : > { %3525 = shalt.err (!%p3522_p9)
}
  0x1e   : > { %s3683_s10 = smov 64   ;;  %s3684_s11 = smov 4  }
  0x1f   : > { %3315 = dma.hbm_to_vmem [thread:$0]  (!%p3769_p10), %s4569_s2, 4608, %s182_s28, [#allocation6], %s3683_s10, %s3683_s10, %s3684_s11  }
  0x20   : > { %s3537_s14 = scalar_lea.vmem %s195_s6, 1536  ;;  %p3545_p2 = scmp.lt.s32.totalorder %s195_s6, %s195_s6 }
  0x21   : > { %p3538_p1 = scmp.ne.s32.totalorder %s195_s6, %s3537_s14  ;;  %p3546_p6 = scmp.lt.s32.totalorder %s3537_s14, %s3537_s14 }
  0x23   : > { %p3540_p12 = pnand %p3538_p1, %p3502_p11  ;;  %p3547_p3 = por %p3546_p6, %p3545_p2 }
  0x25   : > { %p3541_p13 = pneg %p3540_p12 }
  0x27   : > { %p3548_p0 = pnand %p3547_p3, %p3541_p13 }
  0x29   : > { %3551 = shalt.err (!%p3548_p0)
}
  0x2a   : > { %3318 = dma.hbm_to_vmem [thread:$0]  (!%p3769_p10), %s4570_s3, 1536, %s195_s6, [#allocation6], %s3683_s10, %s3683_s10, %s3684_s11  }
  0x2b   : > { %s3563_s17 = scalar_lea.vmem %s208_s8, 384  ;;  %p3571_p9 = scmp.lt.s32.totalorder %s208_s8, %s208_s8 }
  0x2c   : > { %p3564_p5 = scmp.ne.s32.totalorder %s208_s8, %s3563_s17  ;;  %p3572_p12 = scmp.lt.s32.totalorder %s3563_s17, %s3563_s17 }
  0x2e   : > { %p3566_p7 = pnand %p3564_p5, %p3502_p11  ;;  %p3573_p4 = por %p3572_p12, %p3571_p9 }
  0x30   : > { %p3567_p1 = pneg %p3566_p7 }
  0x32   : > { %p3574_p2 = pnand %p3573_p4, %p3567_p1 }
  0x34   : > { %3577 = shalt.err (!%p3574_p2)
}
  0x35   : > { %s3685_s23 = smov 128   ;;  %s3686_s27 = smov 8  }
  0x36   : > { %3321 = dma.hbm_to_vmem [thread:$0]  (!%p3769_p10), %s4571_s4, 384, %s208_s8, [#allocation9], %s3685_s23, %s3685_s23, %s3686_s27  }
  0x37   : > { %s3800_s6 = sadd.s32 1, %s3678_s21   ;;  %s30_s9 = sadd.s32 1, %s3674_s20 }
  0x38   : > { %s27_s7 = ssub.s32 %s3678_s21, %s3800_s6  ;;  %p37_p6 = scmp.ne.s32.totalorder %s3674_s20, %s3670_s19 }
  0x39   : > { %p28_p4 = scmp.eq.s32.totalorder %s27_s7, 0  ;;  %p38_p11 = scmp.eq.s32.totalorder %s3678_s21, 0 }
  0x3a   : > { %p3333_p13 = scmp.lt.s32.totalorder %s3678_s21, 4  ;;  %p4590_p0 = scmp.eq.s32.totalorder %s3742_s22, 3 }
  0x3b   : > { %s3810_s10 = scalar_select %p28_p4, %s3674_s20, %s30_s9  }
  0x3c   : > { %p39_p3 = por %p38_p11, %p37_p6  ;;  %p3814_p5 = por %p4590_p0, %p37_p6 }
  0x3d   : > { %s221_s29 = sand.u32 1, %s3674_s20   ;;  %s2618_s12 = sshll.u32 %s3678_s21, 7 }
  0x3e   : > { %s4591_s11 = scalar_select %p3814_p5, 1, 0 }
  0x3f   : > { %s2617_s8 = sshll.u32 %s221_s29, 3  ;;  %s3823_s15 = scalar_lea.hbm %s4567_s0, %s2618_s12 }
  0x40   : > { %s225_s16 = scalar_lea.vmem [#allocation2], %s2617_s8  ;;  %p3825_p10 = pnand %p3333_p13, %p39_p3 }
  0x41   : > { %s232_s17 = sshll.u32 %s225_s16, 4  ;;  %s222_s27 = scalar_lea.sflag [#allocation3], %s221_s29  ;;  %s233_s17 = int_to_ptr.vmem [resolvable:$true] %s232_s17 }
  0x42   : > { %s3578_s28 = scalar_lea.hbm %s3823_s15, 128  ;;  %p3580_p1 = pneg %p3825_p10 }
  0x43   : > { %p3579_p7 = scmp.ne.s32.totalorder %s3823_s15, %s3578_s28  ;;  %s3583_s9 = scalar_lea.hbm %s4567_s0, 512 }
  0x44   : > { %p3584_p2 = scmp.lt.s32.totalorder %s3823_s15, %s4567_s0  ;;  %p3585_p4 = scmp.lt.s32.totalorder %s3583_s9, %s3578_s28 }
  0x45   : > { %p3581_p9 = pnand %p3580_p1, %p3579_p7 }
  0x46   : > { %p3586_p6 = por %p3585_p4, %p3584_p2 }
  0x47   : > { %p3582_p12 = pneg %p3581_p9 }
  0x49   : > { %p3587_p11 = pnand %p3586_p6, %p3582_p12 }
  0x4b   : > { %3590 = shalt.err (!%p3587_p11)
}
  0x4c   : > { %s3591_s13 = scalar_lea.vmem %s233_s17, 128  ;;  %s3687_s29 = smov [#allocation2]  }
  0x4d   : > { %p3592_p13 = scmp.ne.s32.totalorder %s233_s17, %s3591_s13  ;;  %s3596_s14 = sshll.u32 %s3687_s29, 4  ;;  %s3597_s14 = int_to_ptr.vmem [resolvable:$false] %s3596_s14 }
  0x4e   : > { %s3598_s16 = scalar_lea.vmem %s3597_s14, 256  ;;  %p3599_p7 = scmp.lt.s32.totalorder %s233_s17, %s3597_s14 }
  0x4f   : > { %p3594_p3 = pnand %p3592_p13, %p3580_p1  ;;  %p3600_p9 = scmp.lt.s32.totalorder %s3598_s16, %s3591_s13 }
  0x51   : > { %p3595_p0 = pneg %p3594_p3  ;;  %p3601_p5 = por %p3600_p9, %p3599_p7 }
  0x53   : > { %p3602_p8 = pnand %p3601_p5, %p3595_p0 }
  0x55   : > { %3605 = shalt.err (!%p3602_p8)
}
  0x56   : > { %3325 = dma.hbm_to_vmem [thread:$0]  (!%p3825_p10), %s3823_s15, 128, %s233_s17, %s222_s27  }
  0x57   : > { %p4593_p12 = scmp.ne.s32.totalorder %s4588_s26, 0 }
  0x59   : > { %249 = sbr.rel (%p4593_p12) target bundleno = 6640 (0x19f0), region = 40 }
  0x5e   : > { %s3846_s28 = sand.u32 1, %s3670_s19   ;;  %p4594_p5 = scmp.ne.s32.totalorder %s4586_s24, 0 }
  0x5f   : > { %s2620_s30 = sshll.u32 %s3846_s28, 3  ;;  %s252_s7 = scalar_lea.sflag [#allocation3], %s3846_s28 }
  0x60   : > { %s255_s9 = scalar_lea.vmem [#allocation2], %s2620_s30 }
  0x61   : > { %3649 = dma.done.wait (%p4594_p5), %s252_s7, 128  }
  0x62   : > { %3651 = vsyncadd (%p4594_p5), %s252_s7, 4294967168  ;;  %p4595_p8 = scmp.eq.s32.totalorder %s3742_s22, 0 }
  0x64   : > { %3653 = dma.done.wait (%p4595_p8), [#allocation6], 6144   ;;  %p4596_p10 = pmov %p4595_p8 }
  0x65   : > { %p4597_p1 = pmov %p4595_p8 }
  0x66   : > { %3655 = vsyncadd (%p4596_p10), [#allocation6], 4294961152 }
  0x67   : > { %3657 = dma.done.wait (%p4597_p1), [#allocation9], 384   ;;  %p4598_p2 = pmov %p4597_p1 }
  0x68   : > { %p299_p4 = scmp.lt.s32.totalorder %s3742_s22, 3  ;;  %vm378_vm0 = vcmask 523264   ;;  %v3869_v1 = vld [vmem:[%s255_s9] sm:$0xff]  ;;  %v4582_v23 = vmov 0.0   ;;  %vm3689_vm1 = vmmov 0   ;;  %v3383_v26 = vld [vmem:[#allocation5 + $0x28] sm:$0xff]   ;;  %v308_v39 = vlaneseq }
  0x69   : > { %3659 = vsyncadd (%p4598_p2), [#allocation9], 4294966912  ;;  %v565_v4 = vsel %vm378_vm0, %v3869_v1, 0.0  ;;  %v3379_v21 = vld [vmem:[#allocation5 + $0x38] sm:$0xff]   ;;  %2888 = vmatprep.subr.bf16.mxu1 %v4582_v23  ;;  %2912 = vmatprep.subr.bf16.mxu0 %v4582_v23  ;;  %v3381_v24 = vld [vmem:[#allocation5 + $0x30] sm:$0xff]   ;;  %vm926_vm2 = vcmask 130048  }
  0x6a   : > { %s300_s26 = scalar_select %p299_p4, %s3742_s22, 3  ;;  %566 = vadd.xlane.f32.xlu1 %v565_v4  ;;  %v3891_v22 = vld [vmem:[#allocation5 + $0x18] sm:$0xff]   ;;  %2889 = vmatpush3.bf16.msra.mxu1 %v3379_v21  ;;  %v3896_v25 = vld [vmem:[#allocation5 + $0x10] sm:$0xff]   ;;  %v3905_v27 = vld [vmem:[#allocation5 + $0x8] sm:$0xff]   ;;  %v3917_v40 = vshrl.u32 %v308_v39, 7 }
  0x6b   : > { %2913 = vmatpush3.bf16.msra.mxu0 %v3891_v22  ;;  %2890 = vmatprep.subr.bf16.mxu1 %v4582_v23  ;;  %v3385_v28 = vld [vmem:[#allocation5 + $0x20] sm:$0xff]   ;;  %v3946_v62 = vld [vmem:[#allocation5 + $0xf8] sm:$0xff]   ;;  %v3388_v4 = vld [vmem:[#allocation5 + $0x50] sm:$0xff]   ;;  %s2715_s27 = sshll.u32 %s3742_s22, 7  ;;  %s298_s12 = scalar_lea.vmem [#allocation10], %s2620_s30 }
  0x6c   : > { %s2718_s15 = sshll.u32 %s300_s26, 4  ;;  %2914 = vmatprep.subr.bf16.mxu0 %v4582_v23  ;;  %2896 = vmatprep.mubr.msk.bf16.mxu1 %vm3689_vm1, %v4582_v23  ;;  %v3910_v29 = vld [vmem:[#allocation5] sm:$0xff]   ;;  %v310_v41 = vsub.s32 0, %v3917_v40  ;;  %v318_v43 = vsub.s32 2, %v3917_v40  ;;  %v322_v45 = vsub.s32 3, %v3917_v40  ;;  %v314_v47 = vsub.s32 1, %v3917_v40  ;;  %s4524_s14 = scalar_lea.hbm %s4572_s5, %s2715_s27 }
  0x6d   : > { %s303_s23 = scalar_lea.vmem %s4568_s1, %s2718_s15  ;;  %2920 = vmatprep.mubr.msk.bf16.mxu0 %vm3689_vm1, %v4582_v23  ;;  %v3920_v42 = vld [vmem:[#allocation8] sm:$0xff]  ;;  %v3387_v63 = vld [vmem:[#allocation5 + $0x58] sm:$0xff]   ;;  %s2500_s8 = sshll.u32 %s298_s12, 4  ;;  %s4526_s8 = int_to_ptr.vmem [resolvable:$true] %s2500_s8 }
  0x6e   : > { %v376_v0 = vld [vmem:[%s303_s23] sm:$0xff]  ;;  %v377_v2 = vld [vmem:[%s303_s23 + $0x8] sm:$0xff]  ;;  %2891 = vmatpush3.bf16.msra.mxu1 %v3381_v24  ;;  %v311_v46 = vrot.slane %v3920_v42, %v310_v41  ;;  %v3932_v49 = vrot.slane %v3920_v42, %v318_v43  ;;  %v3937_v52 = vrot.slane %v3920_v42, %v322_v45  ;;  %v315_v54 = vrot.slane %v3920_v42, %v314_v47  ;;  %s2487_s22 = scalar_lea.sflag [#allocation4], %s3846_s28  ;;  %s3606_s16 = scalar_lea.vmem %s4526_s8, 128 }
  0x6f   : > { %v379_v3 = vsel %vm378_vm0, %v376_v0, 0.0  ;;  %v382_v5 = vsel %vm378_vm0, %v377_v2, 0.0  ;;  %2915 = vmatpush3.bf16.msra.mxu0 %v3896_v25  ;;  %2892 = vmatprep.subr.bf16.mxu1 %v4582_v23  ;;  %p3607_p6 = scmp.ne.s32.totalorder %s4526_s8, %s3606_s16  ;;  %p4607_p11 = scmp.ne.s32.totalorder %s4591_s11, 0 }
  0x70   : > { %380 = vadd.xlane.f32.xlu0 %v379_v3  ;;  %2916 = vmatprep.subr.bf16.mxu0 %v4582_v23  ;;  %v3951_v3 = vld [vmem:[#allocation5 + $0xf0] sm:$0xff]   ;;  %s3690_s30 = smov [#allocation10]  }
  0x71   : > { %p3608_p13 = pnand %p3607_p6, %p4607_p11  ;;  %s3610_s7 = sshll.u32 %s3690_s30, 4  ;;  %s3611_s7 = int_to_ptr.vmem [resolvable:$false] %s3610_s7 }
  0x72   : > { %2893 = vmatpush3.bf16.msra.mxu1 %v3383_v26  ;;  %s3612_s9 = scalar_lea.vmem %s3611_s7, 256  ;;  %p3613_p0 = scmp.lt.s32.totalorder %s4526_s8, %s3611_s7 }
  0x73   : > { %2917 = vmatpush3.bf16.msra.mxu0 %v3905_v27  ;;  %2894 = vmatprep.subr.bf16.mxu1 %v4582_v23  ;;  %p3609_p3 = pneg %p3608_p13  ;;  %p3614_p7 = scmp.lt.s32.totalorder %s3612_s9, %s3606_s16 }
  0x74   : > { %383 = vadd.xlane.f32.xlu0 %v382_v5  ;;  %2918 = vmatprep.subr.bf16.mxu0 %v4582_v23  ;;  %v3960_v5 = vld [vmem:[#allocation5 + $0xe8] sm:$0xff]  }
  0x75   : > { %p3615_p9 = por %p3614_p7, %p3613_p0 }
  0x76   : > { %2895 = vmatpush3.bf16.msra.mxu1 %v3385_v28  ;;  %v334_v28 = vsub.s32 6, %v3917_v40 }
  0x77   : > { %2919 = vmatpush3.bf16.msra.mxu0 %v3910_v29  ;;  %2900 = vmatprep.subr.bf16.mxu1 %v4582_v23  ;;  %p3616_p12 = pnand %p3615_p9, %p3609_p3 }
  0x78   : > { %2936 = vmatprep.subr.bf16.mxu0 %v4582_v23 }
  0xf3   : > { %v567_v7 = vpop.xlane.xlu1 %566 }
  0xf4   : > { %v568_v9 = vmul.f32 0.015625, %v567_v7  ;;  %v3390_v7 = vld [vmem:[#allocation5 + $0x40] sm:$0xff]  }
  0xf6   : > { %v3878_v11 = vsub.f32 %v3869_v1, %v568_v9  ;;  %v3972_v9 = vld [vmem:[#allocation5 + $0xd0] sm:$0xff]  }
  0xf8   : > { %v570_v15 = vmul.f32 %v3878_v11, %v3878_v11 }
  0xf9   : > { %v381_v6 = vpop.xlane.xlu0 %380 }
  0xfa   : > { %v386_v8 = vmul.f32 0.015625, %v381_v6  ;;  %v571_v18 = vsel %vm378_vm0, %v570_v15, 0.0  ;;  %v3389_v6 = vld [vmem:[#allocation5 + $0x48] sm:$0xff]   ;;  %v4003_v15 = vld [vmem:[#allocation5 + $0x110] sm:$0xff]  }
  0xfc   : > { %v3875_v10 = vsub.f32 %v376_v0, %v386_v8  ;;  %v3967_v8 = vld [vmem:[#allocation5 + $0xd8] sm:$0xff]  }
  0xfd   : > { %v384_v12 = vpop.xlane.xlu0 %383 }
  0xfe   : > { %v387_v13 = vmul.f32 0.015625, %v384_v12  ;;  %v390_v14 = vmul.f32 %v3875_v10, %v3875_v10  ;;  %v665_v12 = vpack.c.bf16 %v3869_v1, %v3869_v1 }
 0x100   : > { %v3884_v16 = vsub.f32 %v377_v2, %v387_v13  ;;  %v392_v17 = vsel %vm378_vm0, %v390_v14, 0.0  ;;  %v3989_v13 = vld [vmem:[#allocation5 + $0xc0] sm:$0xff]   ;;  %v3996_v14 = vld [vmem:[#allocation5 + $0x118] sm:$0xff]  }
 0x101   : > { %393 = vadd.xlane.f32.xlu1 %v392_v17  ;;  %v4011_v17 = vld [vmem:[#allocation5 + $0x100] sm:$0xff]  }
 0x102   : > { %v391_v19 = vmul.f32 %v3884_v16, %v3884_v16 }
 0x104   : > { %v395_v20 = vsel %vm378_vm0, %v391_v19, 0.0 }
 0x105   : > { %572 = vadd.xlane.f32.xlu1 %v571_v18  ;;  %396 = vadd.xlane.f32.xlu0 %v395_v20  ;;  %v4577_v18 = vsub.s32 7, %v3917_v40 }
 0x107   : > { %v339_v21 = vrot.slane %v3920_v42, %v4577_v18 }
 0x18a   : > { %v394_v30 = vpop.xlane.xlu1 %393 }
 0x18b   : > { %v398_v31 = vmul.f32 0.015625, %v394_v30 }
 0x18d   : > { %v400_v32 = vadd.f32 1e-05, %v398_v31 }
 0x18e   : > { %v573_v33 = vpop.xlane.xlu1 %572  ;;  %v397_v34 = vpop.xlane.xlu0 %396 }
 0x18f   : > { %3427 = vrsqrt.f32 %v400_v32  ;;  %v574_v35 = vmul.f32 0.015625, %v573_v33  ;;  %v399_v36 = vmul.f32 0.015625, %v397_v34 }
 0x191   : > { %v575_v37 = vadd.f32 1e-05, %v574_v35  ;;  %v401_v38 = vadd.f32 1e-05, %v399_v36  ;;  %v4026_v36 = vrot.slane %v3920_v42, %v334_v28 }
 0x193   : > { %3429 = vrsqrt.f32 %v575_v37 }
 0x194   : > { %3431 = vrsqrt.f32 %v401_v38 }
 0x19c   : > { %v3428_v44 = vpop.eup %3427 }
 0x19d   : > { %v404_v48 = vmul.f32 %v3428_v44, %v3875_v10  ;;  %v3979_v10 = vld [vmem:[#allocation5 + $0xc8] sm:$0xff]  }
 0x19e   : > { %v4034_v44 = vld [vmem:[#allocation8 + $0x8] sm:$0xff] }
 0x19f   : > { %v406_v56 = vmul.f32 %v404_v48, %v311_v46 }
 0x1a0   : > { %v3430_v50 = vpop.eup %3429 }
 0x1a1   : > { %v3432_v51 = vpop.eup %3431  ;;  %v577_v53 = vmul.f32 %v3430_v50, %v3878_v11  ;;  %v408_v60 = vadd.f32 %v406_v56, %v315_v54  ;;  %v3981_v11 = vld [vmem:[#allocation5 + $0xe0] sm:$0xff]   ;;  %v343_v50 = vrot.slane %v4034_v44, %v310_v41 }
 0x1a2   : > { %v405_v55 = vmul.f32 %v3432_v51, %v3884_v16  ;;  %v4007_v16 = vld [vmem:[#allocation5 + $0x108] sm:$0xff]  }
 0x1a3   : > { %v578_v57 = vmul.f32 %v577_v53, %v3932_v49 }
 0x1a4   : > { %v407_v58 = vmul.f32 %v405_v55, %v311_v46 }
 0x1a5   : > { %v579_v59 = vadd.f32 %v578_v57, %v3937_v52 }
 0x1a6   : > { %v409_v61 = vadd.f32 %v407_v58, %v315_v54 }
 0x1a7   : > { %v588_v0 = vpack.c.bf16 %v579_v59, %v579_v59 }
 0x1a8   : > { %v419_v2 = vpack.c.bf16 %v409_v61, %v408_v60 }
 0x1a9   : > { %2921 = vmatmul.mubr.msk.bf16.vlgmr.msra.gmra.mxu0 %vm378_vm0, %v588_v0 }
 0x1aa   : > { %2897 = vmatmul.mubr.msk.bf16.vlgmr.msra.gmra.mxu1 %vm378_vm0, %v419_v2  ;;  %2937 = vmatpush3.bf16.msra.mxu0 %v3946_v62 }
 0x1ab   : > { %2901 = vmatpush3.bf16.msra.mxu1 %v3387_v63  ;;  %2908 = vmatprep.mubr.msk.bf16.mxu1 %vm3689_vm1, %v4582_v23 }
 0x1ac   : > { %2902 = vmatprep.subr.bf16.mxu1 %v4582_v23  ;;  %2938 = vmatprep.subr.bf16.mxu0 %v4582_v23 }
 0x1ad   : > { %2944 = vmatprep.mubr.msk.bf16.mxu0 %vm3689_vm1, %v4582_v23 }
 0x1ae   : > { %2939 = vmatpush3.bf16.msra.mxu0 %v3951_v3 }
 0x1af   : > { %2903 = vmatpush3.bf16.msra.mxu1 %v3388_v4  ;;  %2940 = vmatprep.subr.bf16.mxu0 %v4582_v23 }
 0x1b0   : > { %2904 = vmatprep.subr.bf16.mxu1 %v4582_v23 }
 0x1b2   : > { %2941 = vmatpush3.bf16.msra.mxu0 %v3960_v5 }
 0x1b3   : > { %2905 = vmatpush3.bf16.msra.mxu1 %v3389_v6  ;;  %2942 = vmatprep.subr.bf16.mxu0 %v4582_v23 }
 0x1b4   : > { %2906 = vmatprep.subr.bf16.mxu1 %v4582_v23 }
 0x1b6   : > { %2943 = vmatpush3.bf16.msra.mxu0 %v3981_v11 }
 0x1b7   : > { %2907 = vmatpush3.bf16.msra.mxu1 %v3390_v7  ;;  %2960 = vmatprep.subr.bf16.mxu0 %v4582_v23 }
 0x1b8   : > { %2924 = vmatprep.subr.bf16.mxu1 %v4582_v23 }
 0x1b9   : > { %2945 = vmatmul.mubr.msk.bf16.vlgmr.msra.gmra.mxu0 %vm378_vm0, %v665_v12 }
 0x1ba   : > { %2909 = vmatmul.mubr.msk.bf16.vlgmr.msra.gmra.mxu1 %vm378_vm0, %v419_v2  ;;  %2962 = vmatprep.mubr.msk.bf16.mxu0 %vm3689_vm1, %v4582_v23 }
 0x1bb   : > { %2925 = vmatpush3.bf16.msra.mxu1 %v3967_v8  ;;  %2932 = vmatprep.mubr.msk.bf16.mxu1 %vm3689_vm1, %v4582_v23 }
 0x1bc   : > { %2926 = vmatprep.subr.bf16.mxu1 %v4582_v23 }
 0x1bf   : > { %2927 = vmatpush3.bf16.msra.mxu1 %v3972_v9 }
 0x1c0   : > { %2928 = vmatprep.subr.bf16.mxu1 %v4582_v23 }
 0x1c3   : > { %2929 = vmatpush3.bf16.msra.mxu1 %v3979_v10 }
 0x1c4   : > { %2930 = vmatprep.subr.bf16.mxu1 %v4582_v23 }
 0x1c7   : > { %2931 = vmatpush3.bf16.msra.mxu1 %v3989_v13 }
 0x1c8   : > { %2948 = vmatprep.subr.bf16.mxu1 %v4582_v23 }
 0x1ca   : > { %2933 = vmatmul.mubr.msk.bf16.vlgmr.msra.gmra.mxu1 %vm378_vm0, %v665_v12 }
 0x1cb   : > { %2949 = vmatpush3.bf16.msra.mxu1 %v3996_v14  ;;  %2956 = vmatprep.mubr.msk.bf16.mxu1 %vm3689_vm1, %v4582_v23 }
 0x1cc   : > { %2950 = vmatprep.subr.bf16.mxu1 %v4582_v23 }
 0x1cf   : > { %2951 = vmatpush3.bf16.msra.mxu1 %v4003_v15 }
 0x1d0   : > { %2952 = vmatprep.subr.bf16.mxu1 %v4582_v23 }
 0x1d3   : > { %2953 = vmatpush3.bf16.msra.mxu1 %v4007_v16 }
 0x1d4   : > { %2954 = vmatprep.subr.bf16.mxu1 %v4582_v23 }
 0x1d7   : > { %2955 = vmatpush3.bf16.msra.mxu1 %v4011_v17 }
 0x1d8   : > { %2966 = vmatprep.subr.bf16.mxu1 %v4582_v23 }
 0x1da   : > { %2957 = vmatmul.mubr.msk.bf16.vlgmr.msra.gmra.mxu1 %vm378_vm0, %v665_v12 }
 0x1db   : > { %2968 = vmatprep.mubr.msk.bf16.mxu1 %vm3689_vm1, %v4582_v23 }
 0x269   : > { %v650_v19 = vpop.f32.mrf.mxu0 }
 0x26a   : > { %v481_v20 = vpop.f32.mrf.mxu1  ;;  %v651_v39 = vadd.f32 %v650_v19, %v4026_v36 }
 0x26b   : > { %v2922_v24 = vpop.f32.mrf.mxu0  ;;  %v482_v32 = vadd.f32 %v481_v20, %v339_v21 }
 0x26c   : > { %v2898_v26 = vpop.f32.mrf.mxu1  ;;  %v879_v46 = vpack.c.bf16 %v651_v39, %v651_v39  ;;  %v4052_v24 = vld [vmem:[#allocation5 + $0x78] sm:$0xff]  }
 0x26d   : > { %v653_v30 = vpop.f32.mrf.mxu0 }
 0x26e   : > { %v484_v31 = vpop.f32.mrf.mxu1  ;;  %v4055_v30 = vld [vmem:[#allocation5 + $0x70] sm:$0xff]  }
 0x26f   : > { %v485_v33 = vadd.f32 %v484_v31, %v339_v21  ;;  %v2923_v34 = vpop.f32.mrf.mxu0 }
 0x270   : > { %v2899_v35 = vpop.f32.mrf.mxu1 }
 0x271   : > { %v488_v37 = vpack.c.bf16 %v485_v33, %v482_v32  ;;  %v4059_v33 = vld [vmem:[#allocation5 + $0x68] sm:$0xff]  }
 0x273   : > { %v4029_v38 = vsel %vm378_vm0, %v488_v37, 0  ;;  %v4065_v37 = vld [vmem:[#allocation5 + $0x60] sm:$0xff]  }
 0x274   : > { %2961 = vmatpush3.bf16.xpose.msra.mxu0 %v4029_v38 }
 0x275   : > { %2972 = vmatprep.subr.bf16.mxu0 %v4582_v23 }
 0x279   : > { %v4046_v58 = vpop.f32.mrf.mxu0 }
 0x27a   : > { %v556_v48 = vpop.f32.mrf.mxu1 }
 0x27b   : > { %2963 = vmatmul.mubr.msk.bf16.vlgmr.msra.gmra.mxu0 %vm378_vm0, %v879_v46  ;;  %v557_v54 = vadd.f32 %v556_v48, %v343_v50  ;;  %v2946_v59 = vpop.f32.mrf.mxu0 }
 0x27c   : > { %v2910_v51 = vpop.f32.mrf.mxu1  ;;  %2980 = vmatprep.mubr.msk.bf16.mxu0 %vm3689_vm1, %v4582_v23  ;;  %2973 = vmatpush3.bf16.msra.mxu0 %v4052_v24  ;;  %v4085_v59 = vld [vmem:[#allocation5 + $0x80] sm:$0xff]  }
 0x27d   : > { %v803_v41 = vpop.f32.mrf.mxu0  ;;  %2974 = vmatprep.subr.bf16.mxu0 %v4582_v23 }
 0x27e   : > { %v559_v53 = vpop.f32.mrf.mxu1 }
 0x27f   : > { %v560_v55 = vadd.f32 %v559_v53, %v343_v50  ;;  %v2947_v60 = vpop.f32.mrf.mxu0  ;;  %v4070_v53 = vld [vmem:[#allocation5 + $0x98] sm:$0xff]  }
 0x280   : > { %v2911_v56 = vpop.f32.mrf.mxu1  ;;  %2975 = vmatpush3.bf16.msra.mxu0 %v4055_v30  ;;  %v4089_v60 = vld [vmem:[#allocation5 + $0xb8] sm:$0xff]  }
 0x281   : > { %v4042_v57 = vpack.c.bf16 %v560_v55, %v557_v54  ;;  %2976 = vmatprep.subr.bf16.mxu0 %v4582_v23  ;;  %v4074_v55 = vld [vmem:[#allocation5 + $0x90] sm:$0xff]   ;;  %v4080_v56 = vld [vmem:[#allocation5 + $0x88] sm:$0xff]  }
 0x283   : > { %2967 = vmatpush3.bf16.msra.mxu1 %v4042_v57 }
 0x284   : > { %2984 = vmatprep.subr.bf16.mxu1 %v4582_v23  ;;  %2977 = vmatpush3.bf16.msra.mxu0 %v4059_v33 }
 0x285   : > { %2978 = vmatprep.subr.bf16.mxu0 %v4582_v23 }
 0x288   : > { %2979 = vmatpush3.bf16.msra.mxu0 %v4065_v37 }
 0x289   : > { %2996 = vmatprep.subr.bf16.mxu0 %v4582_v23 }
 0x28a   : > { %v4050_v21 = vpop.f32.mrf.mxu1 }
 0x28c   : > { %v2934_v26 = vpop.f32.mrf.mxu1 }
 0x28d   : > { %v4578_v26 = vsub.s32 5, %v3917_v40 }
 0x28e   : > { %v730_v31 = vpop.f32.mrf.mxu1 }
 0x290   : > { %v2935_v32 = vpop.f32.mrf.mxu1 }
 0x29a   : > { %v4062_v34 = vpop.f32.mrf.mxu1 }
 0x29c   : > { %v2958_v35 = vpop.f32.mrf.mxu1 }
 0x29e   : > { %v876_v39 = vpop.f32.mrf.mxu1 }
 0x2a0   : > { %v2959_v46 = vpop.f32.mrf.mxu1 }
 0x2a1   : > { %v4132_v46 = vrot.slane %v4034_v44, %v318_v43 }
 0x33b   : > { %v920_v61 = vpop.f32.mrf.mxu0 }
 0x33c   : > { %v927_v63 = vsel %vm926_vm2, %v920_v61, -inf }
 0x33d   : > { %928 = vmax.xlane.f32.xlu0 %v927_v63  ;;  %v2964_v0 = vpop.f32.mrf.mxu0 }
 0x33f   : > { %v923_v2 = vpop.f32.mrf.mxu0 }
 0x340   : > { %v4094_v2 = vld [vmem:[#allocation5 + $0xb0] sm:$0xff]  }
 0x341   : > { %v2965_v4 = vpop.f32.mrf.mxu0 }
 0x3c6   : > { %v929_v6 = vpop.xlane.xlu0 %928 }
 0x3c7   : > { %v930_v7 = vsub.f32 %v920_v61, %v929_v6  ;;  %v4102_v6 = vld [vmem:[#allocation5 + $0xa8] sm:$0xff]  }
 0x3c9   : > { %v931_v12 = vmul.f32 1.442695, %v930_v7  ;;  %v4106_v7 = vld [vmem:[#allocation5 + $0xa0] sm:$0xff]  }
 0x3cb   : > { %3433 = vpow2.f32 %v931_v12  ;;  %v4579_v12 = vsub.s32 4, %v3917_v40 }
 0x3d8   : > { %v3434_v19 = vpop.eup %3433 }
 0x3d9   : > { %v933_v20 = vsel %vm926_vm2, %v3434_v19, 0.0 }
 0x3da   : > { %934 = vadd.xlane.f32.xlu1 %v933_v20  ;;  %v4123_v20 = vrot.slane %v4034_v44, %v314_v47  ;;  %v4137_v47 = vrot.slane %v4034_v44, %v4578_v26 }
 0x463   : > { %v935_v48 = vpop.xlane.xlu1 %934 }
 0x464   : > { %3435 = vrcp.f32 %v935_v48 }
 0x471   : > { %v3436_v50 = vpop.eup %3435 }
 0x472   : > { %v937_v51 = vmul.f32 %v3436_v50, %v3434_v19  ;;  %v4118_v19 = vrot.slane %v4034_v44, %v4579_v12 }
 0x474   : > { %v938_v54 = vpack.c.bf16 %v937_v51, %v937_v51  ;;  %v728_v35 = vadd.f32 %v4050_v21, %v4118_v19 }
 0x476   : > { %2969 = vmatmul.mubr.msk.bf16.vlgmr.msra.gmra.mxu1 %vm926_vm2, %v938_v54 }
 0x477   : > { %2985 = vmatpush3.bf16.msra.mxu1 %v4070_v53  ;;  %2992 = vmatprep.mubr.msk.bf16.mxu1 %vm3689_vm1, %v4582_v23 }
 0x478   : > { %2986 = vmatprep.subr.bf16.mxu1 %v4582_v23 }
 0x47b   : > { %2987 = vmatpush3.bf16.msra.mxu1 %v4074_v55 }
 0x47c   : > { %2988 = vmatprep.subr.bf16.mxu1 %v4582_v23 }
 0x47f   : > { %2989 = vmatpush3.bf16.msra.mxu1 %v4080_v56 }
 0x480   : > { %2990 = vmatprep.subr.bf16.mxu1 %v4582_v23 }
 0x483   : > { %2991 = vmatpush3.bf16.msra.mxu1 %v4085_v59 }
 0x484   : > { %3008 = vmatprep.subr.bf16.mxu1 %v4582_v23 }
 0x536   : > { %v976_v41 = vpop.f32.mrf.mxu1 }
 0x537   : > { %v991_v61 = vpack.c.bf16 %v976_v41, %v976_v41 }
 0x538   : > { %v2970_v63 = vpop.f32.mrf.mxu1 }
 0x539   : > { %2981 = vmatmul.mubr.msk.bf16.vlgmr.msra.gmra.mxu0 %vm378_vm0, %v991_v61  ;;  %2993 = vmatmul.mubr.msk.bf16.vlgmr.msra.gmra.mxu1 %vm378_vm0, %v991_v61 }
 0x53a   : > { %2997 = vmatpush3.bf16.msra.mxu0 %v4089_v60  ;;  %v979_v0 = vpop.f32.mrf.mxu1  ;;  %3004 = vmatprep.mubr.msk.bf16.mxu0 %vm3689_vm1, %v4582_v23 }
 0x53b   : > { %2998 = vmatprep.subr.bf16.mxu0 %v4582_v23  ;;  %3016 = vmatprep.mubr.msk.bf16.mxu1 %vm3689_vm1, %v4582_v23 }
 0x53c   : > { %v2971_v4 = vpop.f32.mrf.mxu1 }
 0x53d   : > { %v801_v4 = vadd.f32 %v4046_v58, %v4137_v47  ;;  %v4150_v58 = vrot.slane %v4034_v44, %v322_v45 }
 0x53e   : > { %2999 = vmatpush3.bf16.msra.mxu0 %v4094_v2 }
 0x53f   : > { %3000 = vmatprep.subr.bf16.mxu0 %v4582_v23  ;;  %4600 = vst [vmem:[#allocation16_spill] sm:$0xff] %v4150_v58 }
 0x542   : > { %3001 = vmatpush3.bf16.msra.mxu0 %v4102_v6 }
 0x543   : > { %3002 = vmatprep.subr.bf16.mxu0 %v4582_v23 }
 0x546   : > { %3003 = vmatpush3.bf16.msra.mxu0 %v4106_v7 }
 0x547   : > { %3020 = vmatprep.subr.bf16.mxu0 %v4582_v23 }
 0x549   : > { %3005 = vmatmul.mubr.msk.bf16.vlgmr.msra.gmra.mxu0 %vm378_vm0, %v991_v61 }
 0x54a   : > { %3036 = vmatprep.mubr.msk.bf16.mxu0 %vm3689_vm1, %v4582_v23 }
 0x5f9   : > { %v1053_v31 = vpop.f32.mrf.mxu0  ;;  %v1133_v32 = vpop.f32.mrf.mxu1 }
 0x5fa   : > { %v1054_v39 = vadd.f32 %v1053_v31, %v4123_v20  ;;  %v1134_v21 = vadd.f32 %v1133_v32, %v4132_v46  ;;  %v4145_v32 = vrot.slane %v4034_v44, %v334_v28 }
 0x5fb   : > { %v2982_v48 = vpop.f32.mrf.mxu0  ;;  %v2994_v50 = vpop.f32.mrf.mxu1 }
 0x5fc   : > { %v1059_v51 = vadd.f32 %v1054_v39, %v728_v35  ;;  %v1139_v43 = vadd.f32 %v1134_v21, %v801_v4  ;;  %4599 = vst [vmem:[#allocation15_spill] sm:$0xff] %v4145_v32 }
 0x5fd   : > { %v1056_v54 = vpop.f32.mrf.mxu0  ;;  %v1136_v41 = vpop.f32.mrf.mxu1 }
 0x5fe   : > { %v2665_v61 = vmul.f32 -1.442695, %v1059_v51  ;;  %v2671_v31 = vmul.f32 -1.442695, %v1139_v43  ;;  %v874_v54 = vadd.f32 %v4062_v34, %v4145_v32 }
 0x5ff   : > { %v2983_v63 = vpop.f32.mrf.mxu0  ;;  %v2995_v0 = vpop.f32.mrf.mxu1 }
 0x600   : > { %3437 = vpow2.f32 %v2665_v61 }
 0x601   : > { %3439 = vpow2.f32 %v2671_v31 }
 0x609   : > { %v1213_v48 = vpop.f32.mrf.mxu0 }
 0x60b   : > { %v3006_v50 = vpop.f32.mrf.mxu0 }
 0x60d   : > { %v3438_v18 = vpop.eup %3437  ;;  %v1216_v26 = vpop.f32.mrf.mxu0 }
 0x60e   : > { %v1063_v12 = vadd.f32 1.0, %v3438_v18  ;;  %v3440_v39 = vpop.eup %3439  ;;  %v1214_v18 = vadd.f32 %v1213_v48, %v4150_v58 }
 0x60f   : > { %v3007_v35 = vpop.f32.mrf.mxu0  ;;  %v1143_v51 = vadd.f32 1.0, %v3440_v39  ;;  %v4170_v39 = vld [vmem:[#allocation7 + $0x8] sm:$0xff]  }
 0x610   : > { %3441 = vrcp.f32 %v1063_v12  ;;  %v4162_v35 = vld [vmem:[#allocation7 + $0x18] sm:$0xff]  }
 0x611   : > { %3443 = vrcp.f32 %v1143_v51  ;;  %3009 = vmatpush3.bf16.msra.mxu1 %v4162_v35  ;;  %v4173_v51 = vld [vmem:[#allocation7] sm:$0xff]  }
 0x612   : > { %3010 = vmatprep.subr.bf16.mxu1 %v4582_v23 }
 0x61d   : > { %v3442_v41 = vpop.eup %3441 }
 0x61e   : > { %v1219_v12 = vmul.f32 %v3442_v41, %v874_v54  ;;  %v3444_v61 = vpop.eup %3443  ;;  %v4178_v54 = vld [vmem:[#allocation7 + $0x58] sm:$0xff]   ;;  %v4181_v41 = vld [vmem:[#allocation7 + $0x50] sm:$0xff]  }
 0x61f   : > { %v1222_v21 = vsub.f32 1.0, %v3444_v61  ;;  %v1224_v0 = vmul.f32 %v3444_v61, %v3869_v1  ;;  %v4166_v1 = vld [vmem:[#allocation7 + $0x10] sm:$0xff]   ;;  %3021 = vmatpush3.bf16.msra.mxu0 %v4178_v54 }
 0x620   : > { %v1220_v26 = vadd.f32 %v1219_v12, %v1214_v18  ;;  %3011 = vmatpush3.bf16.msra.mxu1 %v4166_v1  ;;  %3022 = vmatprep.subr.bf16.mxu0 %v4582_v23  ;;  %v4185_v18 = vld [vmem:[#allocation7 + $0x48] sm:$0xff]   ;;  %v4189_v12 = vld [vmem:[#allocation7 + $0x40] sm:$0xff]   ;;  %v4197_v61 = vld [vmem:[#allocation7 + $0x30] sm:$0xff]  }
 0x621   : > { %3012 = vmatprep.subr.bf16.mxu1 %v4582_v23 }
 0x622   : > { %3445 = vtanh.f32 %v1220_v26  ;;  %v4193_v26 = vld [vmem:[#allocation7 + $0x38] sm:$0xff]  }
 0x623   : > { %3023 = vmatpush3.bf16.msra.mxu0 %v4181_v41 }
 0x624   : > { %3013 = vmatpush3.bf16.msra.mxu1 %v4170_v39  ;;  %3024 = vmatprep.subr.bf16.mxu0 %v4582_v23 }
 0x625   : > { %3014 = vmatprep.subr.bf16.mxu1 %v4582_v23 }
 0x627   : > { %3025 = vmatpush3.bf16.msra.mxu0 %v4185_v18 }
 0x628   : > { %3015 = vmatpush3.bf16.msra.mxu1 %v4173_v51  ;;  %3026 = vmatprep.subr.bf16.mxu0 %v4582_v23 }
 0x629   : > { %3040 = vmatprep.subr.bf16.mxu1 %v4582_v23 }
 0x62b   : > { %3027 = vmatpush3.bf16.msra.mxu0 %v4189_v12 }
 0x62c   : > { %3028 = vmatprep.subr.bf16.mxu0 %v4582_v23 }
 0x62f   : > { %v3446_v28 = vpop.eup %3445  ;;  %3029 = vmatpush3.bf16.msra.mxu0 %v4193_v26 }
 0x630   : > { %v1223_v63 = vmul.f32 %v3446_v28, %v1222_v21  ;;  %3030 = vmatprep.subr.bf16.mxu0 %v4582_v23 }
 0x632   : > { %v4156_v4 = vadd.f32 %v1224_v0, %v1223_v63  ;;  %v4601_v0 = vsub.s32 4, %v3917_v40 }
 0x633   : > { %3031 = vmatpush3.bf16.msra.mxu0 %v4197_v61 }
 0x634   : > { %v1226_v45 = vsel %vm378_vm0, %v4156_v4, 0.0  ;;  %3032 = vmatprep.subr.bf16.mxu0 %v4582_v23 }
 0x635   : > { %1227 = vadd.xlane.f32.xlu0 %v1226_v45  ;;  %v4205_v45 = vrot.slane %v3920_v42, %v4601_v0 }
 0x6be   : > { %v1228_v34 = vpop.xlane.xlu0 %1227 }
 0x6bf   : > { %v1229_v43 = vmul.f32 0.015625, %v1228_v34 }
 0x6c1   : > { %v1230_v31 = vsub.f32 %v4156_v4, %v1229_v43  ;;  %v4602_v43 = vsub.s32 5, %v3917_v40 }
 0x6c3   : > { %v1231_v48 = vmul.f32 %v1230_v31, %v1230_v31 }
 0x6c5   : > { %v1232_v50 = vsel %vm378_vm0, %v1231_v48, 0.0  ;;  %v4210_v48 = vrot.slane %v3920_v42, %v4602_v43 }
 0x6c6   : > { %1233 = vadd.xlane.f32.xlu1 %v1232_v50 }
 0x74f   : > { %v1234_v21 = vpop.xlane.xlu1 %1233 }
 0x750   : > { %v1235_v28 = vmul.f32 0.015625, %v1234_v21  ;;  %v4603_v21 = vmov 0.0  }
 0x752   : > { %v1236_v63 = vadd.f32 1e-05, %v1235_v28 }
 0x754   : > { %3447 = vrsqrt.f32 %v1236_v63  ;;  %v4604_v63 = vsub.s32 7, %v3917_v40 }
 0x761   : > { %v3448_v34 = vpop.eup %3447 }
 0x762   : > { %v1238_v50 = vmul.f32 %v3448_v34, %v1230_v31 }
 0x764   : > { %v1239_v58 = vmul.f32 %v1238_v50, %v4205_v45 }
 0x766   : > { %v1240_v23 = vadd.f32 %v1239_v58, %v4210_v48 }
 0x768   : > { %v1265_v32 = vpack.c.bf16 %v1240_v23, %v1240_v23  ;;  %v4225_v23 = vld [vmem:[#allocation7 + $0x28] sm:$0xff]  }
 0x769   : > { %3033 = vmatpush3.bf16.msra.mxu0 %v4225_v23 }
 0x76a   : > { %3017 = vmatmul.mubr.msk.bf16.vlgmr.msra.gmra.mxu1 %vm378_vm0, %v1265_v32  ;;  %3034 = vmatprep.subr.bf16.mxu0 %v4603_v21 }
 0x76b   : > { %3041 = vmatpush3.bf16.msra.mxu1 %v3891_v22  ;;  %3048 = vmatprep.mubr.msk.bf16.mxu1 %vm3689_vm1, %v4603_v21  ;;  %v4229_v22 = vld [vmem:[#allocation7 + $0x20] sm:$0xff]  }
 0x76c   : > { %3042 = vmatprep.subr.bf16.mxu1 %v4603_v21 }
 0x76d   : > { %3035 = vmatpush3.bf16.msra.mxu0 %v4229_v22 }
 0x76e   : > { %3064 = vmatprep.subr.bf16.mxu0 %v4603_v21 }
 0x76f   : > { %3043 = vmatpush3.bf16.msra.mxu1 %v3896_v25  ;;  %v4233_v25 = vld [vmem:[#allocation8 + $0x10] ss:$0 sm:$0xff] }
 0x770   : > { %3044 = vmatprep.subr.bf16.mxu1 %v4603_v21 }
 0x773   : > { %3045 = vmatpush3.bf16.msra.mxu1 %v3905_v27 }
 0x774   : > { %3046 = vmatprep.subr.bf16.mxu1 %v4603_v21 }
 0x777   : > { %3047 = vmatpush3.bf16.msra.mxu1 %v3910_v29 }
 0x778   : > { %3052 = vmatprep.subr.bf16.mxu1 %v4603_v21 }
 0x82a   : > { %v1327_v27 = vpop.f32.mrf.mxu1 }
 0x82b   : > { %v1328_v42 = vadd.f32 %v4233_v25, %v1327_v27 }
 0x82c   : > { %v3018_v29 = vpop.f32.mrf.mxu1 }
 0x82d   : > { %v1333_v32 = vmax.f32 %v1328_v42, 0.0 }
 0x82e   : > { %v1330_v58 = vpop.f32.mrf.mxu1 }
 0x82f   : > { %v1334_v31 = vpack.c.bf16 %v1333_v32, %v1333_v32 }
 0x830   : > { %v3019_v28 = vpop.f32.mrf.mxu1 }
 0x831   : > { %3037 = vmatmul.mubr.bf16.vlgmr.msra.gmra.mxu0 %v1334_v31 }
 0x832   : > { %3065 = vmatpush3.bf16.msra.mxu0 %v3946_v62  ;;  %3072 = vmatprep.mubr.msk.bf16.mxu0 %vm3689_vm1, %v4603_v21  ;;  %v4249_v62 = vrot.slane %v4034_v44, %v4604_v63 }
 0x833   : > { %3066 = vmatprep.subr.bf16.mxu0 %v4603_v21 }
 0x836   : > { %3067 = vmatpush3.bf16.msra.mxu0 %v3951_v3 }
 0x837   : > { %3068 = vmatprep.subr.bf16.mxu0 %v4603_v21 }
 0x83a   : > { %3069 = vmatpush3.bf16.msra.mxu0 %v3960_v5 }
 0x83b   : > { %3070 = vmatprep.subr.bf16.mxu0 %v4603_v21 }
 0x83e   : > { %3071 = vmatpush3.bf16.msra.mxu0 %v3981_v11 }
 0x83f   : > { %3088 = vmatprep.subr.bf16.mxu0 %v4603_v21 }
 0x8f1   : > { %v1417_v0 = vpop.f32.mrf.mxu0 }
 0x8f2   : > { %v1423_v34 = vadd.f32 %v1417_v0, %v4156_v4 }
 0x8f3   : > { %v3038_v43 = vpop.f32.mrf.mxu0 }
 0x8f4   : > { %v4253_v3 = vadd.f32 %v1423_v34, %v4249_v62 }
 0x8f5   : > { %v1420_v50 = vpop.f32.mrf.mxu0 }
 0x8f6   : > { %v1484_v5 = vpack.c.bf16 %v4253_v3, %v4253_v3  ;;  %v1425_v27 = vsel %vm378_vm0, %v4253_v3, 0.0 }
 0x8f7   : > { %1426 = vadd.xlane.f32.xlu0 %v1425_v27  ;;  %v3039_v42 = vpop.f32.mrf.mxu0 }
 0x8f8   : > { %3073 = vmatmul.mubr.msk.bf16.vlgmr.msra.gmra.mxu0 %vm378_vm0, %v1484_v5 }
 0x8f9   : > { %3089 = vmatpush3.bf16.xpose.msra.mxu0 %v4029_v38  ;;  %3090 = vmatprep.mubr.msk.bf16.mxu0 %vm3689_vm1, %v4603_v21 }
 0x8fa   : > { %3100 = vmatprep.subr.bf16.mxu0 %v4603_v21 }
 0x980   : > { %v1427_v40 = vpop.xlane.xlu0 %1426 }
 0x981   : > { %v1428_v44 = vmul.f32 0.015625, %v1427_v40 }
 0x983   : > { %v1429_v4 = vsub.f32 %v4253_v3, %v1428_v44 }
 0x985   : > { %v1430_v29 = vmul.f32 %v1429_v4, %v1429_v4 }
 0x987   : > { %v1431_v32 = vsel %vm378_vm0, %v1430_v29, 0.0 }
 0x988   : > { %1432 = vadd.xlane.f32.xlu1 %v1431_v32 }
 0x9b8   : > { %v4266_v58 = vpop.f32.mrf.mxu0 }
 0x9ba   : > { %v3074_v31 = vpop.f32.mrf.mxu0 }
 0x9bc   : > { %v1565_v28 = vpop.f32.mrf.mxu0 }
 0x9be   : > { %v3075_v63 = vpop.f32.mrf.mxu0 }
 0xa11   : > { %v1433_v0 = vpop.xlane.xlu1 %1432 }
 0xa12   : > { %v1434_v34 = vmul.f32 0.015625, %v1433_v0 }
 0xa14   : > { %v1435_v43 = vadd.f32 1e-05, %v1434_v34 }
 0xa16   : > { %3449 = vrsqrt.f32 %v1435_v43 }
 0xa23   : > { %v3450_v50 = vpop.eup %3449 }
 0xa24   : > { %v1437_v27 = vmul.f32 %v3450_v50, %v1429_v4 }
 0xa26   : > { %v1438_v42 = vmul.f32 %v1437_v27, %v3932_v49 }
 0xa28   : > { %v1439_v40 = vadd.f32 %v1438_v42, %v3937_v52 }
 0xa2a   : > { %v1440_v44 = vpack.c.bf16 %v1439_v40, %v1439_v40 }
 0xa2c   : > { %3049 = vmatmul.mubr.msk.bf16.vlgmr.msra.gmra.mxu1 %vm378_vm0, %v1440_v44 }
 0xa2d   : > { %3053 = vmatpush3.bf16.msra.mxu1 %v3967_v8  ;;  %3060 = vmatprep.mubr.msk.bf16.mxu1 %vm3689_vm1, %v4603_v21 }
 0xa2e   : > { %3054 = vmatprep.subr.bf16.mxu1 %v4603_v21 }
 0xa31   : > { %3055 = vmatpush3.bf16.msra.mxu1 %v3972_v9 }
 0xa32   : > { %3056 = vmatprep.subr.bf16.mxu1 %v4603_v21 }
 0xa35   : > { %3057 = vmatpush3.bf16.msra.mxu1 %v3979_v10 }
 0xa36   : > { %3058 = vmatprep.subr.bf16.mxu1 %v4603_v21 }
 0xa39   : > { %3059 = vmatpush3.bf16.msra.mxu1 %v3989_v13 }
 0xa3a   : > { %3076 = vmatprep.subr.bf16.mxu1 %v4603_v21 }
 0xa3c   : > { %3061 = vmatmul.mubr.msk.bf16.vlgmr.msra.gmra.mxu1 %vm378_vm0, %v1484_v5 }
 0xa3d   : > { %3077 = vmatpush3.bf16.msra.mxu1 %v3996_v14  ;;  %3084 = vmatprep.mubr.msk.bf16.mxu1 %vm3689_vm1, %v4603_v21 }
 0xa3e   : > { %3078 = vmatprep.subr.bf16.mxu1 %v4603_v21 }
 0xa41   : > { %3079 = vmatpush3.bf16.msra.mxu1 %v4003_v15 }
 0xa42   : > { %3080 = vmatprep.subr.bf16.mxu1 %v4603_v21 }
 0xa45   : > { %3081 = vmatpush3.bf16.msra.mxu1 %v4007_v16 }
 0xa46   : > { %3082 = vmatprep.subr.bf16.mxu1 %v4603_v21 }
 0xa49   : > { %3083 = vmatpush3.bf16.msra.mxu1 %v4011_v17 }
 0xa4a   : > { %3094 = vmatprep.subr.bf16.mxu1 %v4603_v21 }
 0xa4c   : > { %3085 = vmatmul.mubr.msk.bf16.vlgmr.msra.gmra.mxu1 %vm378_vm0, %v1484_v5 }
 0xa4d   : > { %3095 = vmatpush3.bf16.msra.mxu1 %v4042_v57  ;;  %3096 = vmatprep.mubr.msk.bf16.mxu1 %vm3689_vm1, %v4603_v21 }
 0xa4e   : > { %3112 = vmatprep.subr.bf16.mxu1 %v4603_v21 }
 0xaec   : > { %v1478_v8 = vpop.f32.mrf.mxu1 }
 0xaed   : > { %v1479_v9 = vadd.f32 %v1478_v8, %v4026_v36 }
 0xaee   : > { %v3050_v10 = vpop.f32.mrf.mxu1 }
 0xaef   : > { %v1608_v13 = vpack.c.bf16 %v1479_v9, %v1479_v9 }
 0xaf0   : > { %v1481_v14 = vpop.f32.mrf.mxu1 }
 0xaf1   : > { %3091 = vmatmul.mubr.msk.bf16.vlgmr.msra.gmra.mxu0 %vm378_vm0, %v1608_v13 }
 0xaf2   : > { %v3051_v15 = vpop.f32.mrf.mxu1  ;;  %3101 = vmatpush3.bf16.msra.mxu0 %v4052_v24  ;;  %3108 = vmatprep.mubr.msk.bf16.mxu0 %vm3689_vm1, %v4603_v21 }
 0xaf3   : > { %3102 = vmatprep.subr.bf16.mxu0 %v4603_v21 }
 0xaf6   : > { %3103 = vmatpush3.bf16.msra.mxu0 %v4055_v30 }
 0xaf7   : > { %3104 = vmatprep.subr.bf16.mxu0 %v4603_v21 }
 0xafa   : > { %3105 = vmatpush3.bf16.msra.mxu0 %v4059_v33 }
 0xafb   : > { %3106 = vmatprep.subr.bf16.mxu0 %v4603_v21 }
 0xafc   : > { %v4307_v16 = vpop.f32.mrf.mxu1 }
 0xafe   : > { %v3062_v17 = vpop.f32.mrf.mxu1  ;;  %3107 = vmatpush3.bf16.msra.mxu0 %v4065_v37 }
 0xaff   : > { %3124 = vmatprep.subr.bf16.mxu0 %v4603_v21 }
 0xb00   : > { %v1525_v5 = vpop.f32.mrf.mxu1 }
 0xb02   : > { %v3063_v4 = vpop.f32.mrf.mxu1 }
 0xb0c   : > { %v4311_v29 = vpop.f32.mrf.mxu1 }
 0xb0e   : > { %v3086_v32 = vpop.f32.mrf.mxu1 }
 0xb10   : > { %v1605_v31 = vpop.f32.mrf.mxu1 }
 0xb12   : > { %v3087_v28 = vpop.f32.mrf.mxu1 }
 0xbb1   : > { %v1646_v63 = vpop.f32.mrf.mxu0 }
 0xbb2   : > { %v1652_v0 = vsel %vm926_vm2, %v1646_v63, -inf }
 0xbb3   : > { %1653 = vmax.xlane.f32.xlu0 %v1652_v0  ;;  %v3092_v34 = vpop.f32.mrf.mxu0 }
 0xbb5   : > { %v1649_v43 = vpop.f32.mrf.mxu0 }
 0xbb7   : > { %v3093_v50 = vpop.f32.mrf.mxu0 }
 0xc3c   : > { %v1654_v27 = vpop.xlane.xlu0 %1653 }
 0xc3d   : > { %v1655_v42 = vsub.f32 %v1646_v63, %v1654_v27  ;;  %v1523_v63 = vadd.f32 %v4307_v16, %v4118_v19 }
 0xc3f   : > { %v1656_v40 = vmul.f32 1.442695, %v1655_v42 }
 0xc41   : > { %3451 = vpow2.f32 %v1656_v40 }
 0xc4e   : > { %v3452_v44 = vpop.eup %3451 }
 0xc4f   : > { %v1658_v8 = vsel %vm926_vm2, %v3452_v44, 0.0 }
 0xc50   : > { %1659 = vadd.xlane.f32.xlu1 %v1658_v8 }
 0xcd9   : > { %v1660_v9 = vpop.xlane.xlu1 %1659 }
 0xcda   : > { %3453 = vrcp.f32 %v1660_v9 }
 0xce7   : > { %v3454_v10 = vpop.eup %3453 }
 0xce8   : > { %v1662_v13 = vmul.f32 %v3454_v10, %v3452_v44  ;;  %v1563_v10 = vadd.f32 %v4266_v58, %v4137_v47 }
 0xcea   : > { %v1663_v14 = vpack.c.bf16 %v1662_v13, %v1662_v13 }
 0xcec   : > { %3097 = vmatmul.mubr.msk.bf16.vlgmr.msra.gmra.mxu1 %vm926_vm2, %v1663_v14 }
 0xced   : > { %3113 = vmatpush3.bf16.msra.mxu1 %v4070_v53  ;;  %3120 = vmatprep.mubr.msk.bf16.mxu1 %vm3689_vm1, %v4603_v21 }
 0xcee   : > { %3114 = vmatprep.subr.bf16.mxu1 %v4603_v21 }
 0xcf1   : > { %3115 = vmatpush3.bf16.msra.mxu1 %v4074_v55 }
 0xcf2   : > { %3116 = vmatprep.subr.bf16.mxu1 %v4603_v21 }
 0xcf5   : > { %3117 = vmatpush3.bf16.msra.mxu1 %v4080_v56 }
 0xcf6   : > { %3118 = vmatprep.subr.bf16.mxu1 %v4603_v21 }
 0xcf9   : > { %3119 = vmatpush3.bf16.msra.mxu1 %v4085_v59 }
 0xcfa   : > { %3136 = vmatprep.subr.bf16.mxu1 %v4603_v21 }
 0xdac   : > { %v1701_v15 = vpop.f32.mrf.mxu1 }
 0xdad   : > { %v1707_v17 = vpack.c.bf16 %v1701_v15, %v1701_v15 }
 0xdae   : > { %v3098_v5 = vpop.f32.mrf.mxu1 }
 0xdaf   : > { %3109 = vmatmul.mubr.msk.bf16.vlgmr.msra.gmra.mxu0 %vm378_vm0, %v1707_v17  ;;  %3121 = vmatmul.mubr.msk.bf16.vlgmr.msra.gmra.mxu1 %vm378_vm0, %v1707_v17 }
 0xdb0   : > { %3125 = vmatpush3.bf16.msra.mxu0 %v4089_v60  ;;  %v1704_v4 = vpop.f32.mrf.mxu1  ;;  %3132 = vmatprep.mubr.msk.bf16.mxu0 %vm3689_vm1, %v4603_v21 }
 0xdb1   : > { %3126 = vmatprep.subr.bf16.mxu0 %v4603_v21  ;;  %3137 = vmatpush3.bf16.msra.mxu1 %v4162_v35 }
 0xdb2   : > { %v3099_v32 = vpop.f32.mrf.mxu1  ;;  %3138 = vmatprep.subr.bf16.mxu1 %v4603_v21  ;;  %3144 = vmatprep.mubr.msk.bf16.mxu1 %vm3689_vm1, %v4603_v21 }
 0xdb4   : > { %3127 = vmatpush3.bf16.msra.mxu0 %v4094_v2 }
 0xdb5   : > { %3128 = vmatprep.subr.bf16.mxu0 %v4603_v21  ;;  %3139 = vmatpush3.bf16.msra.mxu1 %v4166_v1 }
 0xdb6   : > { %3140 = vmatprep.subr.bf16.mxu1 %v4603_v21 }
 0xdb8   : > { %3129 = vmatpush3.bf16.msra.mxu0 %v4102_v6 }
 0xdb9   : > { %3130 = vmatprep.subr.bf16.mxu0 %v4603_v21  ;;  %3141 = vmatpush3.bf16.msra.mxu1 %v4170_v39 }
 0xdba   : > { %3142 = vmatprep.subr.bf16.mxu1 %v4603_v21 }
 0xdbc   : > { %3131 = vmatpush3.bf16.msra.mxu0 %v4106_v7 }
 0xdbd   : > { %3143 = vmatpush3.bf16.msra.mxu1 %v4173_v51  ;;  %3148 = vmatprep.subr.bf16.mxu0 %v4603_v21 }
 0xdbe   : > { %3168 = vmatprep.subr.bf16.mxu1 %v4603_v21 }
 0xdbf   : > { %3133 = vmatmul.mubr.msk.bf16.vlgmr.msra.gmra.mxu0 %vm378_vm0, %v1707_v17 }
 0xdc0   : > { %3149 = vmatpush3.bf16.msra.mxu0 %v4178_v54  ;;  %3164 = vmatprep.mubr.msk.bf16.mxu0 %vm3689_vm1, %v4603_v21 }
 0xdc1   : > { %3150 = vmatprep.subr.bf16.mxu0 %v4603_v21 }
 0xdc4   : > { %3151 = vmatpush3.bf16.msra.mxu0 %v4181_v41 }
 0xdc5   : > { %3152 = vmatprep.subr.bf16.mxu0 %v4603_v21 }
 0xdc8   : > { %3153 = vmatpush3.bf16.msra.mxu0 %v4185_v18 }
 0xdc9   : > { %3154 = vmatprep.subr.bf16.mxu0 %v4603_v21 }
 0xdcc   : > { %3155 = vmatpush3.bf16.msra.mxu0 %v4189_v12 }
 0xdcd   : > { %3156 = vmatprep.subr.bf16.mxu0 %v4603_v21 }
 0xdd0   : > { %3157 = vmatpush3.bf16.msra.mxu0 %v4193_v26 }
 0xdd1   : > { %3158 = vmatprep.subr.bf16.mxu0 %v4603_v21 }
 0xdd4   : > { %3159 = vmatpush3.bf16.msra.mxu0 %v4197_v61 }
 0xdd5   : > { %3160 = vmatprep.subr.bf16.mxu0 %v4603_v21 }
 0xdd8   : > { %3161 = vmatpush3.bf16.msra.mxu0 %v4225_v23 }
 0xdd9   : > { %3162 = vmatprep.subr.bf16.mxu0 %v4603_v21 }
 0xddc   : > { %3163 = vmatpush3.bf16.msra.mxu0 %v4229_v22 }
 0xddd   : > { %3192 = vmatprep.subr.bf16.mxu0 %v4603_v21 }
 0xe6f   : > { %v1745_v31 = vpop.f32.mrf.mxu0  ;;  %v1792_v28 = vpop.f32.mrf.mxu1 }
 0xe70   : > { %v1746_v0 = vadd.f32 %v1745_v31, %v4123_v20  ;;  %v1793_v44 = vadd.f32 %v1792_v28, %v4132_v46 }
 0xe71   : > { %v3110_v34 = vpop.f32.mrf.mxu0  ;;  %v3122_v43 = vpop.f32.mrf.mxu1 }
 0xe72   : > { %v1751_v50 = vadd.f32 %v1746_v0, %v1523_v63  ;;  %v1798_v13 = vadd.f32 %v1793_v44, %v1563_v10  ;;  %v4605_v0 = vld [vmem:[#allocation15_spill] sm:$0xff]  ;;  %v4606_v43 = vld [vmem:[#allocation16_spill] sm:$0xff] }
 0xe73   : > { %v1748_v27 = vpop.f32.mrf.mxu0  ;;  %v1795_v42 = vpop.f32.mrf.mxu1  ;;  %v1603_v28 = vadd.f32 %v4311_v29, %v4605_v0 }
 0xe74   : > { %v2697_v40 = vmul.f32 -1.442695, %v1751_v50  ;;  %v2699_v14 = vmul.f32 -1.442695, %v1798_v13 }
 0xe75   : > { %v3111_v8 = vpop.f32.mrf.mxu0  ;;  %v3123_v9 = vpop.f32.mrf.mxu1 }
 0xe76   : > { %3455 = vpow2.f32 %v2697_v40 }
 0xe77   : > { %3457 = vpow2.f32 %v2699_v14 }
 0xe7f   : > { %v1839_v15 = vpop.f32.mrf.mxu0 }
 0xe80   : > { %v1840_v58 = vadd.f32 %v1839_v15, %v4606_v43 }
 0xe81   : > { %v3134_v16 = vpop.f32.mrf.mxu0 }
 0xe83   : > { %v3456_v17 = vpop.eup %3455  ;;  %v1842_v5 = vpop.f32.mrf.mxu0 }
 0xe84   : > { %v1755_v4 = vadd.f32 1.0, %v3456_v17  ;;  %v3458_v31 = vpop.eup %3457 }
 0xe85   : > { %v3135_v32 = vpop.f32.mrf.mxu0  ;;  %v1802_v63 = vadd.f32 1.0, %v3458_v31 }
 0xe86   : > { %3459 = vrcp.f32 %v1755_v4 }
 0xe87   : > { %3461 = vrcp.f32 %v1802_v63 }
 0xe93   : > { %v3460_v34 = vpop.eup %3459 }
 0xe94   : > { %v1845_v50 = vmul.f32 %v3460_v34, %v1603_v28  ;;  %v3462_v42 = vpop.eup %3461 }
 0xe95   : > { %v1848_v40 = vsub.f32 1.0, %v3462_v42  ;;  %v1850_v9 = vmul.f32 %v3462_v42, %v4253_v3  ;;  %v3488_v42 = vld [vmem:[#allocation5] sm:$0xff]  }
 0xe96   : > { %v1846_v27 = vadd.f32 %v1845_v50, %v1840_v58  ;;  %v3485_v58 = vld [vmem:[#allocation5 + $0x18] sm:$0xff]   ;;  %v3486_v50 = vld [vmem:[#allocation5 + $0x10] sm:$0xff]  }
 0xe98   : > { %3463 = vtanh.f32 %v1846_v27  ;;  %v3487_v27 = vld [vmem:[#allocation5 + $0x8] sm:$0xff]  }
 0xea5   : > { %v3464_v44 = vpop.eup %3463 }
 0xea6   : > { %v1849_v8 = vmul.f32 %v3464_v44, %v1848_v40 }
 0xea8   : > { %v1851_v10 = vadd.f32 %v1850_v9, %v1849_v8 }
 0xeaa   : > { %v1852_v13 = vsel %vm378_vm0, %v1851_v10, 0.0 }
 0xeab   : > { %1853 = vadd.xlane.f32.xlu0 %v1852_v13 }
 0xf34   : > { %v1854_v14 = vpop.xlane.xlu0 %1853 }
 0xf35   : > { %v1855_v16 = vmul.f32 0.015625, %v1854_v14 }
 0xf37   : > { %v1856_v29 = vsub.f32 %v1851_v10, %v1855_v16 }
 0xf39   : > { %v1857_v17 = vmul.f32 %v1856_v29, %v1856_v29 }
 0xf3b   : > { %v1858_v5 = vsel %vm378_vm0, %v1857_v17, 0.0  ;;  %v3490_v17 = vld [vmem:[#allocation5 + $0xf0] sm:$0xff]  }
 0xf3c   : > { %1859 = vadd.xlane.f32.xlu1 %v1858_v5  ;;  %v3491_v5 = vld [vmem:[#allocation5 + $0xe8] sm:$0xff]  }
 0xfc5   : > { %v1860_v15 = vpop.xlane.xlu1 %1859 }
 0xfc6   : > { %v1861_v4 = vmul.f32 0.015625, %v1860_v15 }
 0xfc8   : > { %v1862_v32 = vadd.f32 1e-05, %v1861_v4 }
 0xfca   : > { %3465 = vrsqrt.f32 %v1862_v32 }
 0xfd7   : > { %v3466_v31 = vpop.eup %3465 }
 0xfd8   : > { %v1864_v63 = vmul.f32 %v3466_v31, %v1856_v29  ;;  %v3489_v29 = vld [vmem:[#allocation5 + $0xf8] sm:$0xff]  }
 0xfda   : > { %v1865_v28 = vmul.f32 %v1864_v63, %v4205_v45 }
 0xfdc   : > { %v1866_v3 = vadd.f32 %v1865_v28, %v4210_v48 }
 0xfde   : > { %v1867_v34 = vpack.c.bf16 %v1866_v3, %v1866_v3 }
 0xfe0   : > { %3145 = vmatmul.mubr.msk.bf16.vlgmr.msra.gmra.mxu1 %vm378_vm0, %v1867_v34 }
 0xfe1   : > { %3169 = vmatpush3.bf16.msra.mxu1 %v3485_v58  ;;  %3176 = vmatprep.mubr.msk.bf16.mxu1 %vm3689_vm1, %v4603_v21 }
 0xfe2   : > { %3170 = vmatprep.subr.bf16.mxu1 %v4603_v21 }
 0xfe5   : > { %3171 = vmatpush3.bf16.msra.mxu1 %v3486_v50 }
 0xfe6   : > { %3172 = vmatprep.subr.bf16.mxu1 %v4603_v21 }
 0xfe9   : > { %3173 = vmatpush3.bf16.msra.mxu1 %v3487_v27 }
 0xfea   : > { %3174 = vmatprep.subr.bf16.mxu1 %v4603_v21 }
 0xfed   : > { %3175 = vmatpush3.bf16.msra.mxu1 %v3488_v42 }
 0xfee   : > { %3180 = vmatprep.subr.bf16.mxu1 %v4603_v21 }
0x10a0   : > { %v1905_v40 = vpop.f32.mrf.mxu1 }
0x10a1   : > { %v1906_v44 = vadd.f32 %v4233_v25, %v1905_v40 }
0x10a2   : > { %v3146_v8 = vpop.f32.mrf.mxu1 }
0x10a3   : > { %v1911_v9 = vmax.f32 %v1906_v44, 0.0 }
0x10a4   : > { %v1908_v13 = vpop.f32.mrf.mxu1 }
0x10a5   : > { %v1912_v14 = vpack.c.bf16 %v1911_v9, %v1911_v9 }
0x10a6   : > { %v3147_v16 = vpop.f32.mrf.mxu1 }
0x10a7   : > { %3165 = vmatmul.mubr.bf16.vlgmr.msra.gmra.mxu0 %v1912_v14 }
0x10a8   : > { %3193 = vmatpush3.bf16.msra.mxu0 %v3489_v29  ;;  %3200 = vmatprep.mubr.msk.bf16.mxu0 %vm3689_vm1, %v4603_v21 }
0x10a9   : > { %3194 = vmatprep.subr.bf16.mxu0 %v4603_v21 }
0x10ac   : > { %3195 = vmatpush3.bf16.msra.mxu0 %v3490_v17 }
0x10ad   : > { %3196 = vmatprep.subr.bf16.mxu0 %v4603_v21 }
0x10b0   : > { %3197 = vmatpush3.bf16.msra.mxu0 %v3491_v5 }
0x10b1   : > { %3198 = vmatprep.subr.bf16.mxu0 %v4603_v21 }
0x10b4   : > { %3199 = vmatpush3.bf16.msra.mxu0 %v3981_v11 }
0x10b5   : > { %3216 = vmatprep.subr.bf16.mxu0 %v4603_v21 }
0x1167   : > { %v1947_v15 = vpop.f32.mrf.mxu0 }
0x1168   : > { %v1953_v4 = vadd.f32 %v1947_v15, %v1851_v10  ;;  %v3492_v15 = vld [vmem:[#allocation5 + $0xd8] sm:$0xff]  }
0x1169   : > { %v3166_v32 = vpop.f32.mrf.mxu0 }
0x116a   : > { %v4397_v31 = vadd.f32 %v1953_v4, %v4249_v62  ;;  %v3493_v4 = vld [vmem:[#allocation5 + $0xd0] sm:$0xff]   ;;  %v3494_v32 = vld [vmem:[#allocation5 + $0xc8] sm:$0xff]  }
0x116b   : > { %v1950_v63 = vpop.f32.mrf.mxu0 }
0x116c   : > { %v2014_v28 = vpack.c.bf16 %v4397_v31, %v4397_v31  ;;  %v1955_v3 = vsel %vm378_vm0, %v4397_v31, 0.0  ;;  %v3497_v63 = vld [vmem:[#allocation5 + $0x110] sm:$0xff]  }
0x116d   : > { %1956 = vadd.xlane.f32.xlu0 %v1955_v3  ;;  %v3167_v34 = vpop.f32.mrf.mxu0  ;;  %v3498_v3 = vld [vmem:[#allocation5 + $0x108] sm:$0xff]  }
0x116e   : > { %3201 = vmatmul.mubr.msk.bf16.vlgmr.msra.gmra.mxu0 %vm378_vm0, %v2014_v28  ;;  %v3499_v34 = vld [vmem:[#allocation5 + $0x100] sm:$0xff]  }
0x116f   : > { %3217 = vmatpush3.bf16.xpose.msra.mxu0 %v4029_v38  ;;  %3218 = vmatprep.mubr.msk.bf16.mxu0 %vm3689_vm1, %v4603_v21 }
0x1170   : > { %3228 = vmatprep.subr.bf16.mxu0 %v4603_v21 }
0x11f6   : > { %v1957_v11 = vpop.xlane.xlu0 %1956 }
0x11f7   : > { %v1958_v10 = vmul.f32 0.015625, %v1957_v11 }
0x11f9   : > { %v1959_v58 = vsub.f32 %v4397_v31, %v1958_v10 }
0x11fb   : > { %v1960_v50 = vmul.f32 %v1959_v58, %v1959_v58 }
0x11fd   : > { %v1961_v27 = vsel %vm378_vm0, %v1960_v50, 0.0 }
0x11fe   : > { %1962 = vadd.xlane.f32.xlu1 %v1961_v27 }
0x122e   : > { %v4410_v42 = vpop.f32.mrf.mxu0 }
0x1230   : > { %v3202_v40 = vpop.f32.mrf.mxu0 }
0x1232   : > { %v2095_v44 = vpop.f32.mrf.mxu0 }
0x1234   : > { %v3203_v8 = vpop.f32.mrf.mxu0 }
0x1287   : > { %v1963_v9 = vpop.xlane.xlu1 %1962 }
0x1288   : > { %v1964_v38 = vmul.f32 0.015625, %v1963_v9 }
0x128a   : > { %v1965_v13 = vadd.f32 1e-05, %v1964_v38 }
0x128c   : > { %3467 = vrsqrt.f32 %v1965_v13 }
0x1299   : > { %v3468_v14 = vpop.eup %3467 }
0x129a   : > { %v1967_v16 = vmul.f32 %v3468_v14, %v1959_v58 }
0x129c   : > { %v1968_v29 = vmul.f32 %v1967_v16, %v3932_v49  ;;  %v3495_v49 = vld [vmem:[#allocation5 + $0xc0] sm:$0xff]  }
0x129e   : > { %v1969_v17 = vadd.f32 %v1968_v29, %v3937_v52  ;;  %v3496_v52 = vld [vmem:[#allocation5 + $0x118] sm:$0xff]  }
0x12a0   : > { %v1970_v5 = vpack.c.bf16 %v1969_v17, %v1969_v17 }
0x12a2   : > { %3177 = vmatmul.mubr.msk.bf16.vlgmr.msra.gmra.mxu1 %vm378_vm0, %v1970_v5 }
0x12a3   : > { %3181 = vmatpush3.bf16.msra.mxu1 %v3492_v15  ;;  %3188 = vmatprep.mubr.msk.bf16.mxu1 %vm3689_vm1, %v4603_v21 }
0x12a4   : > { %3182 = vmatprep.subr.bf16.mxu1 %v4603_v21 }
0x12a7   : > { %3183 = vmatpush3.bf16.msra.mxu1 %v3493_v4 }
0x12a8   : > { %3184 = vmatprep.subr.bf16.mxu1 %v4603_v21 }
0x12ab   : > { %3185 = vmatpush3.bf16.msra.mxu1 %v3494_v32 }
0x12ac   : > { %3186 = vmatprep.subr.bf16.mxu1 %v4603_v21 }
0x12af   : > { %3187 = vmatpush3.bf16.msra.mxu1 %v3495_v49 }
0x12b0   : > { %3204 = vmatprep.subr.bf16.mxu1 %v4603_v21 }
0x12b2   : > { %3189 = vmatmul.mubr.msk.bf16.vlgmr.msra.gmra.mxu1 %vm378_vm0, %v2014_v28 }
0x12b3   : > { %3205 = vmatpush3.bf16.msra.mxu1 %v3496_v52  ;;  %3212 = vmatprep.mubr.msk.bf16.mxu1 %vm3689_vm1, %v4603_v21 }
0x12b4   : > { %3206 = vmatprep.subr.bf16.mxu1 %v4603_v21 }
0x12b7   : > { %3207 = vmatpush3.bf16.msra.mxu1 %v3497_v63 }
0x12b8   : > { %3208 = vmatprep.subr.bf16.mxu1 %v4603_v21 }
0x12bb   : > { %3209 = vmatpush3.bf16.msra.mxu1 %v3498_v3 }
0x12bc   : > { %3210 = vmatprep.subr.bf16.mxu1 %v4603_v21 }
0x12bf   : > { %3211 = vmatpush3.bf16.msra.mxu1 %v3499_v34 }
0x12c0   : > { %3222 = vmatprep.subr.bf16.mxu1 %v4603_v21 }
0x12c2   : > { %3213 = vmatmul.mubr.msk.bf16.vlgmr.msra.gmra.mxu1 %vm378_vm0, %v2014_v28 }
0x12c3   : > { %3223 = vmatpush3.bf16.msra.mxu1 %v4042_v57  ;;  %3224 = vmatprep.mubr.msk.bf16.mxu1 %vm3689_vm1, %v4603_v21 }
0x12c4   : > { %3240 = vmatprep.subr.bf16.mxu1 %v4603_v21 }
0x1362   : > { %v2008_v11 = vpop.f32.mrf.mxu1 }
0x1363   : > { %v2009_v10 = vadd.f32 %v2008_v11, %v4026_v36 }
0x1364   : > { %v3178_v58 = vpop.f32.mrf.mxu1 }
0x1365   : > { %v2138_v50 = vpack.c.bf16 %v2009_v10, %v2009_v10 }
0x1366   : > { %v2011_v27 = vpop.f32.mrf.mxu1 }
0x1367   : > { %3219 = vmatmul.mubr.msk.bf16.vlgmr.msra.gmra.mxu0 %vm378_vm0, %v2138_v50 }
0x1368   : > { %v3179_v40 = vpop.f32.mrf.mxu1  ;;  %3229 = vmatpush3.bf16.msra.mxu0 %v4052_v24  ;;  %3236 = vmatprep.mubr.msk.bf16.mxu0 %vm3689_vm1, %v4603_v21 }
0x1369   : > { %3230 = vmatprep.subr.bf16.mxu0 %v4603_v21 }
0x136c   : > { %3231 = vmatpush3.bf16.msra.mxu0 %v4055_v30 }
0x136d   : > { %3232 = vmatprep.subr.bf16.mxu0 %v4603_v21 }
0x1370   : > { %3233 = vmatpush3.bf16.msra.mxu0 %v4059_v33 }
0x1371   : > { %3234 = vmatprep.subr.bf16.mxu0 %v4603_v21 }
0x1372   : > { %v4443_v36 = vpop.f32.mrf.mxu1 }
0x1374   : > { %v3190_v57 = vpop.f32.mrf.mxu1  ;;  %3235 = vmatpush3.bf16.msra.mxu0 %v4065_v37 }
0x1375   : > { %3252 = vmatprep.subr.bf16.mxu0 %v4603_v21 }
0x1376   : > { %v2055_v24 = vpop.f32.mrf.mxu1 }
0x1378   : > { %v3191_v28 = vpop.f32.mrf.mxu1 }
0x1382   : > { %v4447_v44 = vpop.f32.mrf.mxu1 }
0x1384   : > { %v3214_v8 = vpop.f32.mrf.mxu1 }
0x1386   : > { %v2135_v9 = vpop.f32.mrf.mxu1 }
0x1388   : > { %v3215_v30 = vpop.f32.mrf.mxu1 }
0x1427   : > { %v2176_v38 = vpop.f32.mrf.mxu0 }
0x1428   : > { %v2182_v13 = vsel %vm926_vm2, %v2176_v38, -inf }
0x1429   : > { %2183 = vmax.xlane.f32.xlu0 %v2182_v13  ;;  %v3220_v33 = vpop.f32.mrf.mxu0 }
0x142b   : > { %v2179_v14 = vpop.f32.mrf.mxu0 }
0x142d   : > { %v3221_v16 = vpop.f32.mrf.mxu0 }
0x14b2   : > { %v2184_v29 = vpop.xlane.xlu0 %2183 }
0x14b3   : > { %v2185_v17 = vsub.f32 %v2176_v38, %v2184_v29 }
0x14b5   : > { %v2186_v5 = vmul.f32 1.442695, %v2185_v17 }
0x14b7   : > { %3469 = vpow2.f32 %v2186_v5 }
0x14c4   : > { %v3470_v37 = vpop.eup %3469 }
0x14c5   : > { %v2188_v15 = vsel %vm926_vm2, %v3470_v37, 0.0 }
0x14c6   : > { %2189 = vadd.xlane.f32.xlu1 %v2188_v15 }
0x154f   : > { %v2190_v4 = vpop.xlane.xlu1 %2189 }
0x1550   : > { %3471 = vrcp.f32 %v2190_v4 }
0x155d   : > { %v3472_v32 = vpop.eup %3471 }
0x155e   : > { %v2192_v49 = vmul.f32 %v3472_v32, %v3470_v37 }
0x1560   : > { %v2193_v52 = vpack.c.bf16 %v2192_v49, %v2192_v49 }
0x1562   : > { %3225 = vmatmul.mubr.msk.bf16.vlgmr.msra.gmra.mxu1 %vm926_vm2, %v2193_v52 }
0x1563   : > { %3241 = vmatpush3.bf16.msra.mxu1 %v4070_v53  ;;  %3248 = vmatprep.mubr.msk.bf16.mxu1 %vm3689_vm1, %v4603_v21 }
0x1564   : > { %3242 = vmatprep.subr.bf16.mxu1 %v4603_v21 }
0x1567   : > { %3243 = vmatpush3.bf16.msra.mxu1 %v4074_v55 }
0x1568   : > { %3244 = vmatprep.subr.bf16.mxu1 %v4603_v21 }
0x156b   : > { %3245 = vmatpush3.bf16.msra.mxu1 %v4080_v56 }
0x156c   : > { %3246 = vmatprep.subr.bf16.mxu1 %v4603_v21 }
0x156f   : > { %3247 = vmatpush3.bf16.msra.mxu1 %v4085_v59 }
0x1570   : > { %3264 = vmatprep.subr.bf16.mxu1 %v4603_v21 }
0x1622   : > { %v2231_v63 = vpop.f32.mrf.mxu1 }
0x1623   : > { %v2237_v3 = vpack.c.bf16 %v2231_v63, %v2231_v63 }
0x1624   : > { %v3226_v53 = vpop.f32.mrf.mxu1 }
0x1625   : > { %3237 = vmatmul.mubr.msk.bf16.vlgmr.msra.gmra.mxu0 %vm378_vm0, %v2237_v3  ;;  %3249 = vmatmul.mubr.msk.bf16.vlgmr.msra.gmra.mxu1 %vm378_vm0, %v2237_v3 }
0x1626   : > { %3253 = vmatpush3.bf16.msra.mxu0 %v4089_v60  ;;  %v2234_v55 = vpop.f32.mrf.mxu1  ;;  %3260 = vmatprep.mubr.msk.bf16.mxu0 %vm3689_vm1, %v4603_v21 }
0x1627   : > { %3254 = vmatprep.subr.bf16.mxu0 %v4603_v21  ;;  %3265 = vmatpush3.bf16.msra.mxu1 %v4162_v35 }
0x1628   : > { %v3227_v56 = vpop.f32.mrf.mxu1  ;;  %3266 = vmatprep.subr.bf16.mxu1 %v4603_v21  ;;  %3272 = vmatprep.mubr.msk.bf16.mxu1 %vm3689_vm1, %v4603_v21 }
0x162a   : > { %3255 = vmatpush3.bf16.msra.mxu0 %v4094_v2  ;;  %v2053_v2 = vadd.f32 %v4443_v36, %v4118_v19 }
0x162b   : > { %3256 = vmatprep.subr.bf16.mxu0 %v4603_v21  ;;  %3267 = vmatpush3.bf16.msra.mxu1 %v4166_v1 }
0x162c   : > { %3268 = vmatprep.subr.bf16.mxu1 %v4603_v21 }
0x162e   : > { %3257 = vmatpush3.bf16.msra.mxu0 %v4102_v6 }
0x162f   : > { %3258 = vmatprep.subr.bf16.mxu0 %v4603_v21  ;;  %3269 = vmatpush3.bf16.msra.mxu1 %v4170_v39 }
0x1630   : > { %3270 = vmatprep.subr.bf16.mxu1 %v4603_v21 }
0x1632   : > { %3259 = vmatpush3.bf16.msra.mxu0 %v4106_v7 }
0x1633   : > { %3271 = vmatpush3.bf16.msra.mxu1 %v4173_v51  ;;  %3276 = vmatprep.subr.bf16.mxu0 %v4603_v21 }
0x1635   : > { %3261 = vmatmul.mubr.msk.bf16.vlgmr.msra.gmra.mxu0 %vm378_vm0, %v2237_v3 }
0x1636   : > { %3277 = vmatpush3.bf16.msra.mxu0 %v4178_v54  ;;  %3292 = vmatprep.mubr.msk.bf16.mxu0 %vm3689_vm1, %v4603_v21 }
0x1637   : > { %3278 = vmatprep.subr.bf16.mxu0 %v4603_v21 }
0x163a   : > { %3279 = vmatpush3.bf16.msra.mxu0 %v4181_v41 }
0x163b   : > { %3280 = vmatprep.subr.bf16.mxu0 %v4603_v21 }
0x163e   : > { %3281 = vmatpush3.bf16.msra.mxu0 %v4185_v18 }
0x163f   : > { %3282 = vmatprep.subr.bf16.mxu0 %v4603_v21 }
0x1642   : > { %3283 = vmatpush3.bf16.msra.mxu0 %v4189_v12 }
0x1643   : > { %3284 = vmatprep.subr.bf16.mxu0 %v4603_v21 }
0x1646   : > { %3285 = vmatpush3.bf16.msra.mxu0 %v4193_v26  ;;  %v2093_v26 = vadd.f32 %v4410_v42, %v4137_v47 }
0x1647   : > { %3286 = vmatprep.subr.bf16.mxu0 %v4603_v21 }
0x164a   : > { %3287 = vmatpush3.bf16.msra.mxu0 %v4197_v61 }
0x164b   : > { %3288 = vmatprep.subr.bf16.mxu0 %v4603_v21 }
0x164e   : > { %3289 = vmatpush3.bf16.msra.mxu0 %v4225_v23 }
0x164f   : > { %3290 = vmatprep.subr.bf16.mxu0 %v4603_v21 }
0x1652   : > { %3291 = vmatpush3.bf16.msra.mxu0 %v4229_v22 }
0x16e5   : > { %v2275_v59 = vpop.f32.mrf.mxu0  ;;  %v2322_v60 = vpop.f32.mrf.mxu1 }
0x16e6   : > { %v2276_v6 = vadd.f32 %v2275_v59, %v4123_v20  ;;  %v2323_v41 = vadd.f32 %v2322_v60, %v4132_v46  ;;  %v2133_v46 = vadd.f32 %v4447_v44, %v4605_v0 }
0x16e7   : > { %v3238_v7 = vpop.f32.mrf.mxu0  ;;  %v3250_v35 = vpop.f32.mrf.mxu1 }
0x16e8   : > { %v2281_v1 = vadd.f32 %v2276_v6, %v2053_v2  ;;  %v2328_v61 = vadd.f32 %v2323_v41, %v2093_v26 }
0x16e9   : > { %v2278_v39 = vpop.f32.mrf.mxu0  ;;  %v2325_v51 = vpop.f32.mrf.mxu1 }
0x16ea   : > { %v2709_v54 = vmul.f32 -1.442695, %v2281_v1  ;;  %v2711_v21 = vmul.f32 -1.442695, %v2328_v61 }
0x16eb   : > { %v3239_v18 = vpop.f32.mrf.mxu0  ;;  %v3251_v12 = vpop.f32.mrf.mxu1 }
0x16ec   : > { %3473 = vpow2.f32 %v2709_v54 }
0x16ed   : > { %3475 = vpow2.f32 %v2711_v21 }
0x16f5   : > { %v2369_v23 = vpop.f32.mrf.mxu0 }
0x16f6   : > { %v2370_v47 = vadd.f32 %v2369_v23, %v4606_v43 }
0x16f7   : > { %v3262_v19 = vpop.f32.mrf.mxu0 }
0x16f9   : > { %v3474_v20 = vpop.eup %3473  ;;  %v2372_v22 = vpop.f32.mrf.mxu0 }
0x16fa   : > { %v2285_v34 = vadd.f32 1.0, %v3474_v20  ;;  %v3476_v10 = vpop.eup %3475 }
0x16fb   : > { %v3263_v11 = vpop.f32.mrf.mxu0  ;;  %v2332_v58 = vadd.f32 1.0, %v3476_v10 }
0x16fc   : > { %3477 = vrcp.f32 %v2285_v34 }
0x16fd   : > { %3479 = vrcp.f32 %v2332_v58 }
0x1709   : > { %v3478_v50 = vpop.eup %3477 }
0x170a   : > { %v2375_v42 = vmul.f32 %v3478_v50, %v2133_v46  ;;  %v3480_v40 = vpop.eup %3479 }
0x170b   : > { %v2378_v36 = vsub.f32 1.0, %v3480_v40  ;;  %v2380_v28 = vmul.f32 %v3480_v40, %v4397_v31 }
0x170c   : > { %v2376_v27 = vadd.f32 %v2375_v42, %v2370_v47 }
0x170e   : > { %3481 = vtanh.f32 %v2376_v27 }
0x171b   : > { %v3482_v57 = vpop.eup %3481 }
0x171c   : > { %v2379_v24 = vmul.f32 %v3482_v57, %v2378_v36 }
0x171e   : > { %v2381_v8 = vadd.f32 %v2380_v28, %v2379_v24 }
0x1720   : > { %v2382_v9 = vsel %vm378_vm0, %v2381_v8, 0.0 }
0x1721   : > { %2383 = vadd.xlane.f32.xlu0 %v2382_v9 }
0x17aa   : > { %v2384_v30 = vpop.xlane.xlu0 %2383 }
0x17ab   : > { %v2385_v38 = vmul.f32 0.015625, %v2384_v30 }
0x17ad   : > { %v2386_v0 = vsub.f32 %v2381_v8, %v2385_v38 }
0x17af   : > { %v2387_v44 = vmul.f32 %v2386_v0, %v2386_v0 }
0x17b1   : > { %v2388_v13 = vsel %vm378_vm0, %v2387_v44, 0.0 }
0x17b2   : > { %2389 = vadd.xlane.f32.xlu1 %v2388_v13 }
0x183b   : > { %v2390_v43 = vpop.xlane.xlu1 %2389 }
0x183c   : > { %v2391_v33 = vmul.f32 0.015625, %v2390_v43 }
0x183e   : > { %v2392_v14 = vadd.f32 1e-05, %v2391_v33 }
0x1840   : > { %3483 = vrsqrt.f32 %v2392_v14 }
0x184d   : > { %v3484_v16 = vpop.eup %3483 }
0x184e   : > { %v2394_v29 = vmul.f32 %v3484_v16, %v2386_v0 }
0x1850   : > { %v2395_v31 = vmul.f32 %v2394_v29, %v4205_v45 }
0x1852   : > { %v2396_v17 = vadd.f32 %v2395_v31, %v4210_v48 }
0x1854   : > { %v2397_v5 = vpack.c.bf16 %v2396_v17, %v2396_v17 }
0x1856   : > { %3273 = vmatmul.mubr.msk.bf16.vlgmr.msra.gmra.mxu1 %vm378_vm0, %v2397_v5 }
0x1916   : > { %v2435_v37 = vpop.f32.mrf.mxu1 }
0x1917   : > { %v2436_v15 = vadd.f32 %v4233_v25, %v2435_v37 }
0x1918   : > { %v3274_v4 = vpop.f32.mrf.mxu1 }
0x1919   : > { %v2441_v32 = vmax.f32 %v2436_v15, 0.0 }
0x191a   : > { %v2438_v49 = vpop.f32.mrf.mxu1 }
0x191b   : > { %v2442_v52 = vpack.c.bf16 %v2441_v32, %v2441_v32 }
0x191c   : > { %v3275_v63 = vpop.f32.mrf.mxu1 }
0x191d   : > { %3293 = vmatmul.mubr.bf16.vlgmr.msra.gmra.mxu0 %v2442_v52 }
0x19dd   : > { %v2477_v3 = vpop.f32.mrf.mxu0 }
0x19de   : > { %v2483_v45 = vadd.f32 %v2477_v3, %v2381_v8 }
0x19df   : > { %v3294_v48 = vpop.f32.mrf.mxu0 }
0x19e0   : > { %v2484_v53 = vadd.f32 %v2483_v45, %v4249_v62 }
0x19e1   : > { %v2480_v25 = vpop.f32.mrf.mxu0 }
0x19e2   : > { %2485 = vst.msk [vmem:[%s298_s12] sm:$0xff] %vm378_vm0, %v2484_v53 }
0x19e3   : > { %v3295_v55 = vpop.f32.mrf.mxu0 }
0x19e4   : > { %3619 = shalt.err (!%p3616_p12)
}
0x19e5   : > { %s3620_s26 = scalar_lea.hbm %s4524_s14, 128  ;;  %s3624_s17 = scalar_lea.hbm %s4572_s5, 512 }
0x19e6   : > { %p3621_p5 = scmp.ne.s32.totalorder %s4524_s14, %s3620_s26  ;;  %p3625_p1 = scmp.lt.s32.totalorder %s4524_s14, %s4572_s5 }
0x19e7   : > { %p3626_p2 = scmp.lt.s32.totalorder %s3624_s17, %s3620_s26 }
0x19e8   : > { %p3622_p8 = pnand %p3621_p5, %p4607_p11 }
0x19e9   : > { %p3627_p4 = por %p3626_p2, %p3625_p1 }
0x19ea   : > { %p3623_p10 = pneg %p3622_p8 }
0x19ec   : > { %p3628_p6 = pnand %p3627_p4, %p3623_p10 }
0x19ee   : > { %3631 = shalt.err (!%p3628_p6)
}
0x19ef   : > { %3310 = dma.vmem_to_hbm [thread:$0]  (%p4607_p11), %s4526_s8, 128, %s4524_s14, %s2487_s22  }
0x19f0 PF: > { %p3337_p13 = scmp.ge.s32.totalorder %s3678_s21, 2  ;;  %s2512_s27 = sand.u32 1, %s3666_s18  }
0x19f1   : > { %p4608_p3 = scmp.ne.s32.totalorder %s4587_s25, 0  ;;  %s2513_s12 = scalar_lea.sflag [#allocation4], %s2512_s27 }
0x19f3   : > { %p3327_p0 = pnand %p3337_p13, %p4608_p3 }
0x19f5   : > { %p3328_p7 = pneg %p3327_p0 }
0x19f7   : > { %3661 = dma.done.wait (%p3328_p7), %s2513_s12, 128  }
0x19f8   : > { %3663 = vsyncadd (%p3328_p7), %s2513_s12, 4294967168  ;;  %p20_p9 = scmp.ge.s32.totalorder %s3800_s6, 6   ;;  %s4609_s18 = smov %s3670_s19 }
0x19f9   : > { %s4610_s19 = smov %s3674_s20  ;;  %s4611_s20 = smov %s3810_s10 }
0x19fa   : > { %s4612_s21 = smov %s3800_s6  ;;  %22 = sbr.rel (!%p20_p9) target bundleno = 7 (0x7), region = 108 }
0x19ff   :  { %2518 = vsyncpa [#allocation3], 1 }
0x1a00   :  { %2520 = vsyncpa [#allocation3 + $0x1], 1 }
0x1a01   :  { %2521 = vsyncpa [#allocation6], 1 }
0x1a02   :  { %2522 = vsyncpa [#allocation9], 1 }
0x1a03   :  { %2523 = vsyncpa [#allocation4], 1 }
0x1a04   :  { %2525 = vsyncpa [#allocation4 + $0x1], 1 }

</bundles_post_ra>
